<compile_context>
chip_gen: v7x
topology: tpu7x:2x2x1
jax: 0.10.0
libtpu: 0.0.40
codegen_flags: <defaults>
</compile_context>

<pallas_src>
import functools

import jax
import jax.numpy as jnp
from jax import lax
from jax.experimental import pallas as pl
from jax.experimental.pallas import tpu as pltpu

_HI = lax.Precision.HIGHEST   # only on the tiny (MIP x C) conv dots


# ---------------------------------------------------------------------------
# Parameter folding: inference BatchNorm folded into conv1; biases as columns.
# ---------------------------------------------------------------------------
def fold_ca_params(w1, b1, gamma, beta, run_mean, run_var, eps, wh, bh, ww, bw):
    scale = gamma / jnp.sqrt(run_var + eps)                      # (MIP,)
    shift = beta - run_mean * scale
    w1f = (w1 * scale[:, None]).astype(jnp.float32)              # (MIP, C)
    b1f = ((b1 * scale + shift)[:, None]).astype(jnp.float32)    # (MIP, 1)
    return (w1f, b1f,
            wh.astype(jnp.float32), bh[:, None].astype(jnp.float32),
            ww.astype(jnp.float32), bw[:, None].astype(jnp.float32))


# ---------------------------------------------------------------------------
# Constant one-hot selection matrices (exact in bf16, unscaled).  Rows/cols in
# the lane-padding region [HW, HW_pad) are all-zero so padded x never
# contributes to the pooled means and the padded outputs are exactly zero.
# ---------------------------------------------------------------------------
def _selection_matrices(h, w, hw_pad):
    hw = h * w
    r = jnp.arange(hw_pad)
    row_h = jnp.where(r < hw, r // w, h)      # out-of-range -> matches nothing
    row_w = jnp.where(r < hw, r % w, w)
    sp_h = (row_h[:, None] == jnp.arange(h)[None, :]).astype(jnp.bfloat16)  # (HWp, H)
    sp_w = (row_w[:, None] == jnp.arange(w)[None, :]).astype(jnp.bfloat16)  # (HWp, W)
    return sp_h, sp_w, sp_h.T, sp_w.T          # + se_h (H, HWp), se_w (W, HWp)


def _h_swish(y):
    return y * jnp.clip(y + 3.0, 0.0, 6.0) * (1.0 / 6.0)


def _attention_vectors(pool_h, pool_w, w1, b1, wh, bh, ww, bw):
    """Shared 1x1 conv (BN folded) + h_swish, then per-branch conv + sigmoid."""
    y_h = _h_swish(jnp.dot(w1, pool_h, preferred_element_type=jnp.float32,
                           precision=_HI) + b1)                    # (MIP, H)
    y_w = _h_swish(jnp.dot(w1, pool_w, preferred_element_type=jnp.float32,
                           precision=_HI) + b1)                    # (MIP, W)
    a_h = jax.nn.sigmoid(jnp.dot(wh, y_h, preferred_element_type=jnp.float32,
                                 precision=_HI) + bh)              # (C, H)
    a_w = jax.nn.sigmoid(jnp.dot(ww, y_w, preferred_element_type=jnp.float32,
                                 precision=_HI) + bw)              # (C, W)
    return a_h, a_w


# ---------------------------------------------------------------------------
# Kernel 1: fully fused (one HBM pass over x per image).
# ---------------------------------------------------------------------------
def _ca_fused_kernel(x_ref, sph_ref, spw_ref, seh_ref, sew_ref,
                     w1_ref, b1_ref, wh_ref, bh_ref, ww_ref, bw_ref,
                     out_ref, *, inv_w, inv_h):
    # x block: (1, C, HWp); spatial flattened (+128-padded) on the lane axis.
    xb = x_ref[0].astype(jnp.bfloat16)     # MXU operand; no-op when I/O is bf16

    # Coordinate pooling on the MXU: single-pass bf16, f32 accumulation.
    pool_h = jnp.dot(xb, sph_ref[...], preferred_element_type=jnp.float32) * inv_w
    pool_w = jnp.dot(xb, spw_ref[...], preferred_element_type=jnp.float32) * inv_h

    a_h, a_w = _attention_vectors(pool_h, pool_w, w1_ref[...], b1_ref[...],
                                  wh_ref[...], bh_ref[...],
                                  ww_ref[...], bw_ref[...])

    # Expand a_h -> (C, HWp) and consume it immediately so only one (C, HWp)
    # f32 temporary is live at a time.  se_* are exact 0/1 in bf16.
    att_h = jnp.dot(a_h.astype(jnp.bfloat16), seh_ref[...],
                    preferred_element_type=jnp.float32)
    tmp = x_ref[0] * att_h
    att_w = jnp.dot(a_w.astype(jnp.bfloat16), sew_ref[...],
                    preferred_element_type=jnp.float32)
    out_ref[0] = (tmp * att_w).astype(out_ref.dtype)


# ---------------------------------------------------------------------------
# Split path, kernel A: coordinate pooling accumulated over HW chunks
# (reduction axis last), then the tiny convs emit a_h / a_w at the last chunk.
# ---------------------------------------------------------------------------
def _ca_pool_kernel(x_ref, sph_ref, spw_ref,
                    w1_ref, b1_ref, wh_ref, bh_ref, ww_ref, bw_ref,
                    ah_ref, aw_ref, ph_acc, pw_acc, *, inv_w, inv_h):
    k = pl.program_id(1)

    @pl.when(k == 0)
    def _():
        ph_acc[...] = jnp.zeros_like(ph_acc)
        pw_acc[...] = jnp.zeros_like(pw_acc)

    xb = x_ref[0].astype(jnp.bfloat16)                               # (C, T)
    ph_acc[...] += jnp.dot(xb, sph_ref[...], preferred_element_type=jnp.float32)
    pw_acc[...] += jnp.dot(xb, spw_ref[...], preferred_element_type=jnp.float32)

    @pl.when(k == pl.num_programs(1) - 1)
    def _():
        a_h, a_w = _attention_vectors(ph_acc[...] * inv_w, pw_acc[...] * inv_h,
                                      w1_ref[...], b1_ref[...], wh_ref[...],
                                      bh_ref[...], ww_ref[...], bw_ref[...])
        ah_ref[0] = a_h
        aw_ref[0] = a_w


# ---------------------------------------------------------------------------
# Split path, kernel B: out = x * expand(a_h) * expand(a_w), tiled over HW.
# ---------------------------------------------------------------------------
def _ca_apply_kernel(x_ref, ah_ref, aw_ref, seh_ref, sew_ref, out_ref):
    att_h = jnp.dot(ah_ref[0].astype(jnp.bfloat16), seh_ref[...],
                    preferred_element_type=jnp.float32)
    tmp = x_ref[0] * att_h
    att_w = jnp.dot(aw_ref[0].astype(jnp.bfloat16), sew_ref[...],
                    preferred_element_type=jnp.float32)
    out_ref[0] = (tmp * att_w).astype(out_ref.dtype)


# ---------------------------------------------------------------------------
# Wrapper
# ---------------------------------------------------------------------------
def _vmem_capacity_bytes():
    try:
        return int(pltpu.get_tpu_info().vmem_capacity_bytes)
    except Exception:                                   # pragma: no cover
        return 128 << 20


def _const_specs(arrays, grid_ndim, single_buffer):
    """BlockSpecs for grid-invariant constants (single-buffered if supported)."""
    specs = []
    for a in arrays:
        nd = a.ndim
        if grid_ndim == 1:
            idx = lambda i, _nd=nd: (0,) * _nd
        else:
            idx = lambda i, k, _nd=nd: (0,) * _nd
        if single_buffer:
            specs.append(pl.BlockSpec(a.shape, idx, pipeline_mode=pl.Buffered(1)))
        else:
            specs.append(pl.BlockSpec(a.shape, idx))
    return specs


def _pick_chunk(hw_pad, target):
    t = max(128, min(hw_pad, (max(target, 128) // 128) * 128))
    while hw_pad % t:
        t -= 128
    return t


def _ca_forward(x, params, *, force_split, hw_chunk, single_buffer_consts):
    n, c, h, w = x.shape
    w1f, b1f, wh, bh, ww, bw = params
    mip = w1f.shape[0]
    assert wh.shape[0] == c, "CA output channels must match input channels"

    hw = h * w
    hw_pad = ((hw + 127) // 128) * 128                  # lane-dense, unmasked stores
    x_flat = x.reshape(n, c, hw)
    if hw_pad != hw:
        x_flat = jnp.pad(x_flat, ((0, 0), (0, 0), (0, hw_pad - hw)))

    sp_h, sp_w, se_h, se_w = _selection_matrices(h, w, hw_pad)
    weights = (w1f, b1f, wh, bh, ww, bw)

    capacity = _vmem_capacity_bytes()
    itemsize = x.dtype.itemsize
    xblk = c * hw_pad
    const_mult = 1 if single_buffer_consts else 2
    wgt_bytes = (mip * c + 2 * c * mip + mip + 2 * c) * 4
    sel_bytes = 2 * hw_pad * (h + w) * 2                # all four bf16 sel matrices
    fused_need = (2 * 2 * xblk * itemsize               # double-buffered x + out blocks
                  + xblk * (2 + 4 + 4)                  # bf16 x + two live f32 temps
                  + const_mult * (sel_bytes + wgt_bytes)
                  + (4 << 20))                          # headroom

    use_split = force_split or fused_need > int(0.7 * capacity)

    if not use_split:
        vmem_limit = int(min(max(fused_need, 32 << 20), int(0.9 * capacity)))
        kernel = functools.partial(_ca_fused_kernel, inv_w=1.0 / w, inv_h=1.0 / h)
        consts = (sp_h, sp_w, se_h, se_w) + weights
        out_flat = pl.pallas_call(
            kernel,
            out_shape=jax.ShapeDtypeStruct((n, c, hw_pad), x.dtype),
            grid=(n,),
            in_specs=[pl.BlockSpec((1, c, hw_pad), lambda i: (i, 0, 0))]
                     + _const_specs(consts, 1, single_buffer_consts),
            out_specs=pl.BlockSpec((1, c, hw_pad), lambda i: (i, 0, 0)),
            compiler_params=pltpu.CompilerParams(
                dimension_semantics=("parallel",),
                vmem_limit_bytes=vmem_limit),
        )(x_flat, *consts)
    else:
        # Two-kernel split for large C*H*W (v7x 64 MiB VMEM) — also used here
        # when forced, to exercise/validate the path.
        t = _pick_chunk(hw_pad, hw_chunk)
        kt = hw_pad // t

        # ---- kernel A: pooled stats over HW chunks -> a_h (N,C,H), a_w (N,C,W)
        a_need = (2 * c * t * itemsize + c * t * 2
                  + 2 * t * (h + w) * 2
                  + 4 * c * (h + w) * 4
                  + const_mult * wgt_bytes + (2 << 20))
        kernel_a = functools.partial(_ca_pool_kernel, inv_w=1.0 / w, inv_h=1.0 / h)
        a_h_all, a_w_all = pl.pallas_call(
            kernel_a,
            out_shape=(jax.ShapeDtypeStruct((n, c, h), jnp.float32),
                       jax.ShapeDtypeStruct((n, c, w), jnp.float32)),
            grid=(n, kt),
            in_specs=[pl.BlockSpec((1, c, t), lambda i, k: (i, 0, k)),
                      pl.BlockSpec((t, h), lambda i, k: (k, 0)),
                      pl.BlockSpec((t, w), lambda i, k: (k, 0))]
                     + _const_specs(weights, 2, single_buffer_consts),
            out_specs=(pl.BlockSpec((1, c, h), lambda i, k: (i, 0, 0)),
                       pl.BlockSpec((1, c, w), lambda i, k: (i, 0, 0))),
            scratch_shapes=[pltpu.VMEM((c, h), jnp.float32),
                            pltpu.VMEM((c, w), jnp.float32)],
            compiler_params=pltpu.CompilerParams(
                dimension_semantics=("parallel", "arbitrary"),
                vmem_limit_bytes=int(min(max(a_need, 32 << 20),
                                         int(0.9 * capacity)))),
        )(x_flat, sp_h, sp_w, *weights)

        # ---- kernel B: mem-bound multiply, both axes parallel (v7x megacore)
        b_need = (2 * 2 * c * t * itemsize + 2 * c * t * 4
                  + 2 * 2 * c * (h + w) * 4 + 2 * t * (h + w) * 2 + (2 << 20))
        out_flat = pl.pallas_call(
            _ca_apply_kernel,
            out_shape=jax.ShapeDtypeStruct((n, c, hw_pad), x.dtype),
            grid=(n, kt),
            in_specs=[pl.BlockSpec((1, c, t), lambda i, k: (i, 0, k)),
                      pl.BlockSpec((1, c, h), lambda i, k: (i, 0, 0)),
                      pl.BlockSpec((1, c, w), lambda i, k: (i, 0, 0)),
                      pl.BlockSpec((h, t), lambda i, k: (0, k)),
                      pl.BlockSpec((w, t), lambda i, k: (0, k))],
            out_specs=pl.BlockSpec((1, c, t), lambda i, k: (i, 0, k)),
            compiler_params=pltpu.CompilerParams(
                dimension_semantics=("parallel", "parallel"),
                vmem_limit_bytes=int(min(max(b_need, 32 << 20),
                                         int(0.9 * capacity)))),
        )(x_flat, a_h_all, a_w_all, se_h, se_w)

    out = out_flat[:, :, :hw] if hw_pad != hw else out_flat
    return out.reshape(n, c, h, w)


def ca_forward(x, params, *, force_split=False, hw_chunk=8192):
    try:
        return _ca_forward(x, params, force_split=force_split,
                           hw_chunk=hw_chunk, single_buffer_consts=True)
    except Exception:
        # Fallback for jax versions without pipeline_mode=pl.Buffered(1)
        # support on pallas_call BlockSpecs.
        return _ca_forward(x, params, force_split=force_split,
                           hw_chunk=hw_chunk, single_buffer_consts=False)


# ---------------------------------------------------------------------------
# Pure-JAX reference of the PyTorch forward (eval-mode BatchNorm).
# ---------------------------------------------------------------------------
def ca_ref(x, raw_params):
    w1, b1, gamma, beta, run_mean, run_var, eps, wh, bh, ww, bw = raw_params
    n, c, h, w = x.shape
    pool_h = jnp.mean(x, axis=3)                                 # (N, C, H)
    pool_w = jnp.mean(x, axis=2)                                 # (N, C, W)
    y = jnp.concatenate([pool_h, pool_w], axis=2)                # (N, C, H+W)
    y = jnp.einsum('mc,ncl->nml', w1, y, precision=_HI) + b1.reshape(1, -1, 1)
    scale = (gamma / jnp.sqrt(run_var + eps)).reshape(1, -1, 1)
    shift = beta.reshape(1, -1, 1) - run_mean.reshape(1, -1, 1) * scale
    y = y * scale + shift
    y = y * jnp.clip(y + 3.0, 0.0, 6.0) / 6.0
    y_h, y_w = y[:, :, :h], y[:, :, h:]
    a_h = jax.nn.sigmoid(jnp.einsum('om,nml->nol', wh, y_h, precision=_HI)
                         + bh.reshape(1, -1, 1))
    a_w = jax.nn.sigmoid(jnp.einsum('om,nml->nol', ww, y_w, precision=_HI)
                         + bw.reshape(1, -1, 1))
    return x * a_w[:, :, None, :] * a_h[:, :, :, None]


if __name__ == "__main__":
    # N=2, C(inp=oup)=4, H=W=16, reduction=8 -> mip = max(8, 4//8) = 8
    N, C, H, W = 2, 4, 16, 16
    inp = oup = C
    reduction = 8
    mip = max(8, inp // reduction)
    eps = 1e-5

    key = jax.random.PRNGKey(0)
    ks = jax.random.split(key, 12)

    x = jax.random.normal(ks[0], (N, C, H, W), dtype=jnp.float32)

    w1 = jax.random.normal(ks[1], (mip, inp), dtype=jnp.float32) * 0.2
    b1 = 0.1 * jax.random.normal(ks[2], (mip,), dtype=jnp.float32)
    gamma = 1.0 + 0.1 * jax.random.normal(ks[3], (mip,), dtype=jnp.float32)
    beta = 0.1 * jax.random.normal(ks[4], (mip,), dtype=jnp.float32)
    run_mean = 0.1 * jax.random.normal(ks[5], (mip,), dtype=jnp.float32)
    run_var = jax.random.uniform(ks[6], (mip,), dtype=jnp.float32,
                                 minval=0.5, maxval=1.5)
    wh = jax.random.normal(ks[7], (oup, mip), dtype=jnp.float32) * 0.2
    bh = 0.1 * jax.random.normal(ks[8], (oup,), dtype=jnp.float32)
    ww = jax.random.normal(ks[9], (oup, mip), dtype=jnp.float32) * 0.2
    bw = 0.1 * jax.random.normal(ks[10], (oup,), dtype=jnp.float32)

    raw = (w1, b1, gamma, beta, run_mean, run_var, eps, wh, bh, ww, bw)
    folded = fold_ca_params(*raw)

    def _check(name, out, ref_val):
        out = jax.block_until_ready(out)
        # bf16 single-pass MXU on the HW-sized dots -> allow ~1% deviation.
        if not jnp.allclose(out, ref_val, rtol=2e-2, atol=2e-3):
            max_err = float(jnp.max(jnp.abs(out - ref_val)))
            raise AssertionError(
                f"{name}: Pallas CA kernel mismatch vs reference (max abs err {max_err})")

    ref = ca_ref(x, raw)

    # 1) default fully fused single-pass kernel
    _check("fused", ca_forward(x, folded), ref)

    # 2) two-kernel split (large-shape / v7x fallback), forced with a small HW
    #    chunk so the chunked pooling accumulation is exercised.
    _check("split", ca_forward(x, folded, force_split=True, hw_chunk=128), ref)

    # 3) non-128-multiple spatial size -> exercises the lane-padding path
    H2 = W2 = 7
    x2 = jax.random.normal(ks[11], (1, C, H2, W2), dtype=jnp.float32)
    _check("padded", ca_forward(x2, folded), ca_ref(x2, raw))

    print("KERNEL_OK")
</pallas_src>

<mosaic_0001>
module attributes {stable_mosaic.version = 11 : i64} {
  func.func @_ca_fused_kernel(%arg0: i32, %arg1: memref<1x4x256xf32, #tpu.memory_space<vmem>>, %arg2: memref<256x16xbf16, #tpu.memory_space<vmem>>, %arg3: memref<256x16xbf16, #tpu.memory_space<vmem>>, %arg4: memref<16x256xbf16, #tpu.memory_space<vmem>>, %arg5: memref<16x256xbf16, #tpu.memory_space<vmem>>, %arg6: memref<8x4xf32, #tpu.memory_space<vmem>>, %arg7: memref<8x1xf32, #tpu.memory_space<vmem>>, %arg8: memref<4x8xf32, #tpu.memory_space<vmem>>, %arg9: memref<4x1xf32, #tpu.memory_space<vmem>>, %arg10: memref<4x8xf32, #tpu.memory_space<vmem>>, %arg11: memref<4x1xf32, #tpu.memory_space<vmem>>, %arg12: memref<1x4x256xf32, #tpu.memory_space<vmem>>) attributes {dimension_semantics = [#tpu.dimension_semantics<parallel>], iteration_bounds = array<i64: 2>, scalar_prefetch = 0 : i64, scratch_operands = 0 : i64, tpu.core_type = #tpu.core_type<tc>, window_params = [{transform_indices = @transform_0, window_bounds = array<i64: 1, 4, 256>}, {pipeline_mode = #tpu.pipeline_mode<synchronous>, transform_indices = @transform_1, window_bounds = array<i64: 256, 16>}, {pipeline_mode = #tpu.pipeline_mode<synchronous>, transform_indices = @transform_2, window_bounds = array<i64: 256, 16>}, {pipeline_mode = #tpu.pipeline_mode<synchronous>, transform_indices = @transform_3, window_bounds = array<i64: 16, 256>}, {pipeline_mode = #tpu.pipeline_mode<synchronous>, transform_indices = @transform_4, window_bounds = array<i64: 16, 256>}, {pipeline_mode = #tpu.pipeline_mode<synchronous>, transform_indices = @transform_5, window_bounds = array<i64: 8, 4>}, {pipeline_mode = #tpu.pipeline_mode<synchronous>, transform_indices = @transform_6, window_bounds = array<i64: 8, 1>}, {pipeline_mode = #tpu.pipeline_mode<synchronous>, transform_indices = @transform_7, window_bounds = array<i64: 4, 8>}, {pipeline_mode = #tpu.pipeline_mode<synchronous>, transform_indices = @transform_8, window_bounds = array<i64: 4, 1>}, {pipeline_mode = #tpu.pipeline_mode<synchronous>, transform_indices = @transform_9, window_bounds = array<i64: 4, 8>}, {pipeline_mode = #tpu.pipeline_mode<synchronous>, transform_indices = @transform_10, window_bounds = array<i64: 4, 1>}, {transform_indices = @transform_11, window_bounds = array<i64: 1, 4, 256>}]} {
    %c0 = arith.constant 0 : index
    %c0_0 = arith.constant 0 : index
    %c0_1 = arith.constant 0 : index
    %0 = vector.load %arg1[%c0, %c0_0, %c0_1] : memref<1x4x256xf32, #tpu.memory_space<vmem>>, vector<1x4x256xf32>
    %1 = vector.shape_cast %0 : vector<1x4x256xf32> to vector<4x256xf32>
    %2 = arith.truncf %1 : vector<4x256xf32> to vector<4x256xbf16>
    %c0_2 = arith.constant 0 : index
    %c0_3 = arith.constant 0 : index
    %3 = vector.load %arg2[%c0_2, %c0_3] : memref<256x16xbf16, #tpu.memory_space<vmem>>, vector<256x16xbf16>
    %cst = arith.constant dense<0.000000e+00> : vector<4x16xf32>
    %4 = tpu.matmul %2, %3, %cst {dimension_numbers = #tpu.dot_dimension_numbers<[1], [0], [0], [1], [0, 0, 1, 1], [], []>} : vector<4x256xbf16>, vector<256x16xbf16>, vector<4x16xf32> -> vector<4x16xf32>
    %cst_4 = arith.constant 6.250000e-02 : f32
    %5 = vector.broadcast %cst_4 : f32 to vector<4x16xf32>
    %6 = arith.mulf %4, %5 : vector<4x16xf32>
    %c0_5 = arith.constant 0 : index
    %c0_6 = arith.constant 0 : index
    %7 = vector.load %arg3[%c0_5, %c0_6] : memref<256x16xbf16, #tpu.memory_space<vmem>>, vector<256x16xbf16>
    %cst_7 = arith.constant dense<0.000000e+00> : vector<4x16xf32>
    %8 = tpu.matmul %2, %7, %cst_7 {dimension_numbers = #tpu.dot_dimension_numbers<[1], [0], [0], [1], [0, 0, 1, 1], [], []>} : vector<4x256xbf16>, vector<256x16xbf16>, vector<4x16xf32> -> vector<4x16xf32>
    %cst_8 = arith.constant 6.250000e-02 : f32
    %9 = vector.broadcast %cst_8 : f32 to vector<4x16xf32>
    %10 = arith.mulf %8, %9 : vector<4x16xf32>
    %c0_9 = arith.constant 0 : index
    %c0_10 = arith.constant 0 : index
    %11 = vector.load %arg6[%c0_9, %c0_10] : memref<8x4xf32, #tpu.memory_space<vmem>>, vector<8x4xf32>
    %c0_11 = arith.constant 0 : index
    %c0_12 = arith.constant 0 : index
    %12 = vector.load %arg7[%c0_11, %c0_12] : memref<8x1xf32, #tpu.memory_space<vmem>>, vector<8x1xf32>
    %c0_13 = arith.constant 0 : index
    %c0_14 = arith.constant 0 : index
    %13 = vector.load %arg8[%c0_13, %c0_14] : memref<4x8xf32, #tpu.memory_space<vmem>>, vector<4x8xf32>
    %c0_15 = arith.constant 0 : index
    %c0_16 = arith.constant 0 : index
    %14 = vector.load %arg9[%c0_15, %c0_16] : memref<4x1xf32, #tpu.memory_space<vmem>>, vector<4x1xf32>
    %c0_17 = arith.constant 0 : index
    %c0_18 = arith.constant 0 : index
    %15 = vector.load %arg10[%c0_17, %c0_18] : memref<4x8xf32, #tpu.memory_space<vmem>>, vector<4x8xf32>
    %c0_19 = arith.constant 0 : index
    %c0_20 = arith.constant 0 : index
    %16 = vector.load %arg11[%c0_19, %c0_20] : memref<4x1xf32, #tpu.memory_space<vmem>>, vector<4x1xf32>
    %cst_21 = arith.constant dense<0.000000e+00> : vector<8x16xf32>
    %17 = tpu.matmul %11, %6, %cst_21 {dimension_numbers = #tpu.dot_dimension_numbers<[1], [0], [0], [1], [0, 0, 1, 1], [], []>, precision = #tpu.contract_precision<fp32>} : vector<8x4xf32>, vector<4x16xf32>, vector<8x16xf32> -> vector<8x16xf32>
    %18 = vector.broadcast %12 : vector<8x1xf32> to vector<8x16xf32>
    %19 = arith.addf %17, %18 : vector<8x16xf32>
    %cst_22 = arith.constant 3.000000e+00 : f32
    %20 = vector.broadcast %cst_22 : f32 to vector<8x16xf32>
    %21 = arith.addf %19, %20 : vector<8x16xf32>
    %cst_23 = arith.constant 0.000000e+00 : f32
    %cst_24 = arith.constant 6.000000e+00 : f32
    %22 = vector.broadcast %cst_23 : f32 to vector<8x16xf32>
    %23 = arith.maximumf %22, %21 : vector<8x16xf32>
    %24 = vector.broadcast %cst_24 : f32 to vector<8x16xf32>
    %25 = arith.minimumf %24, %23 : vector<8x16xf32>
    %26 = arith.mulf %19, %25 : vector<8x16xf32>
    %cst_25 = arith.constant 0.166666672 : f32
    %27 = vector.broadcast %cst_25 : f32 to vector<8x16xf32>
    %28 = arith.mulf %26, %27 : vector<8x16xf32>
    %cst_26 = arith.constant dense<0.000000e+00> : vector<8x16xf32>
    %29 = tpu.matmul %11, %10, %cst_26 {dimension_numbers = #tpu.dot_dimension_numbers<[1], [0], [0], [1], [0, 0, 1, 1], [], []>, precision = #tpu.contract_precision<fp32>} : vector<8x4xf32>, vector<4x16xf32>, vector<8x16xf32> -> vector<8x16xf32>
    %30 = vector.broadcast %12 : vector<8x1xf32> to vector<8x16xf32>
    %31 = arith.addf %29, %30 : vector<8x16xf32>
    %cst_27 = arith.constant 3.000000e+00 : f32
    %32 = vector.broadcast %cst_27 : f32 to vector<8x16xf32>
    %33 = arith.addf %31, %32 : vector<8x16xf32>
    %cst_28 = arith.constant 0.000000e+00 : f32
    %cst_29 = arith.constant 6.000000e+00 : f32
    %34 = vector.broadcast %cst_28 : f32 to vector<8x16xf32>
    %35 = arith.maximumf %34, %33 : vector<8x16xf32>
    %36 = vector.broadcast %cst_29 : f32 to vector<8x16xf32>
    %37 = arith.minimumf %36, %35 : vector<8x16xf32>
    %38 = arith.mulf %31, %37 : vector<8x16xf32>
    %cst_30 = arith.constant 0.166666672 : f32
    %39 = vector.broadcast %cst_30 : f32 to vector<8x16xf32>
    %40 = arith.mulf %38, %39 : vector<8x16xf32>
    %cst_31 = arith.constant dense<0.000000e+00> : vector<4x16xf32>
    %41 = tpu.matmul %13, %28, %cst_31 {dimension_numbers = #tpu.dot_dimension_numbers<[1], [0], [0], [1], [0, 0, 1, 1], [], []>, precision = #tpu.contract_precision<fp32>} : vector<4x8xf32>, vector<8x16xf32>, vector<4x16xf32> -> vector<4x16xf32>
    %42 = vector.broadcast %14 : vector<4x1xf32> to vector<4x16xf32>
    %43 = arith.addf %41, %42 : vector<4x16xf32>
    %44 = arith.negf %43 : vector<4x16xf32>
    %45 = math.exp %44 : vector<4x16xf32>
    %cst_32 = arith.constant 1.000000e+00 : f32
    %46 = vector.broadcast %cst_32 : f32 to vector<4x16xf32>
    %47 = arith.addf %46, %45 : vector<4x16xf32>
    %48 = arith.divf %46, %47 : vector<4x16xf32>
    %cst_33 = arith.constant dense<0.000000e+00> : vector<4x16xf32>
    %49 = tpu.matmul %15, %40, %cst_33 {dimension_numbers = #tpu.dot_dimension_numbers<[1], [0], [0], [1], [0, 0, 1, 1], [], []>, precision = #tpu.contract_precision<fp32>} : vector<4x8xf32>, vector<8x16xf32>, vector<4x16xf32> -> vector<4x16xf32>
    %50 = vector.broadcast %16 : vector<4x1xf32> to vector<4x16xf32>
    %51 = arith.addf %49, %50 : vector<4x16xf32>
    %52 = arith.negf %51 : vector<4x16xf32>
    %53 = math.exp %52 : vector<4x16xf32>
    %cst_34 = arith.constant 1.000000e+00 : f32
    %54 = vector.broadcast %cst_34 : f32 to vector<4x16xf32>
    %55 = arith.addf %54, %53 : vector<4x16xf32>
    %56 = arith.divf %54, %55 : vector<4x16xf32>
    %57 = arith.truncf %48 : vector<4x16xf32> to vector<4x16xbf16>
    %c0_35 = arith.constant 0 : index
    %c0_36 = arith.constant 0 : index
    %58 = vector.load %arg4[%c0_35, %c0_36] : memref<16x256xbf16, #tpu.memory_space<vmem>>, vector<16x256xbf16>
    %cst_37 = arith.constant dense<0.000000e+00> : vector<4x256xf32>
    %59 = tpu.matmul %57, %58, %cst_37 {dimension_numbers = #tpu.dot_dimension_numbers<[1], [0], [0], [1], [0, 0, 1, 1], [], []>} : vector<4x16xbf16>, vector<16x256xbf16>, vector<4x256xf32> -> vector<4x256xf32>
    %c0_38 = arith.constant 0 : index
    %c0_39 = arith.constant 0 : index
    %c0_40 = arith.constant 0 : index
    %60 = vector.load %arg1[%c0_38, %c0_39, %c0_40] : memref<1x4x256xf32, #tpu.memory_space<vmem>>, vector<1x4x256xf32>
    %61 = vector.shape_cast %60 : vector<1x4x256xf32> to vector<4x256xf32>
    %62 = arith.mulf %61, %59 : vector<4x256xf32>
    %63 = arith.truncf %56 : vector<4x16xf32> to vector<4x16xbf16>
    %c0_41 = arith.constant 0 : index
    %c0_42 = arith.constant 0 : index
    %64 = vector.load %arg5[%c0_41, %c0_42] : memref<16x256xbf16, #tpu.memory_space<vmem>>, vector<16x256xbf16>
    %cst_43 = arith.constant dense<0.000000e+00> : vector<4x256xf32>
    %65 = tpu.matmul %63, %64, %cst_43 {dimension_numbers = #tpu.dot_dimension_numbers<[1], [0], [0], [1], [0, 0, 1, 1], [], []>} : vector<4x16xbf16>, vector<16x256xbf16>, vector<4x256xf32> -> vector<4x256xf32>
    %66 = arith.mulf %62, %65 : vector<4x256xf32>
    %c0_44 = arith.constant 0 : index
    %c0_45 = arith.constant 0 : index
    %c0_46 = arith.constant 0 : index
    %67 = vector.load %arg12[%c0_44, %c0_45, %c0_46] : memref<1x4x256xf32, #tpu.memory_space<vmem>>, vector<1x4x256xf32>
    %68 = vector.shape_cast %67 : vector<1x4x256xf32> to vector<4x256xf32>
    %69 = vector.shape_cast %66 : vector<4x256xf32> to vector<1x4x256xf32>
    tpu.vector_store %arg12[%c0_44, %c0_45, %c0_46], %69 {strides = array<i32>} : memref<1x4x256xf32, #tpu.memory_space<vmem>>, vector<1x4x256xf32>,
    return
  }
  func.func @transform_0(%arg0: i32) -> (i32, i32, i32) {
    %c0_i32 = arith.constant 0 : i32
    %c0_i32_0 = arith.constant 0 : i32
    %c0_i32_1 = arith.constant 0 : i32
    return %arg0, %c0_i32, %c0_i32_0 : i32, i32, i32
  }
  func.func @transform_1(%arg0: i32) -> (i32, i32) {
    %c0_i32 = arith.constant 0 : i32
    %c0_i32_0 = arith.constant 0 : i32
    %c0_i32_1 = arith.constant 0 : i32
    return %c0_i32, %c0_i32_0 : i32, i32
  }
  func.func @transform_2(%arg0: i32) -> (i32, i32) {
    %c0_i32 = arith.constant 0 : i32
    %c0_i32_0 = arith.constant 0 : i32
    %c0_i32_1 = arith.constant 0 : i32
    return %c0_i32, %c0_i32_0 : i32, i32
  }
  func.func @transform_3(%arg0: i32) -> (i32, i32) {
    %c0_i32 = arith.constant 0 : i32
    %c0_i32_0 = arith.constant 0 : i32
    %c0_i32_1 = arith.constant 0 : i32
    return %c0_i32, %c0_i32_0 : i32, i32
  }
  func.func @transform_4(%arg0: i32) -> (i32, i32) {
    %c0_i32 = arith.constant 0 : i32
    %c0_i32_0 = arith.constant 0 : i32
    %c0_i32_1 = arith.constant 0 : i32
    return %c0_i32, %c0_i32_0 : i32, i32
  }
  func.func @transform_5(%arg0: i32) -> (i32, i32) {
    %c0_i32 = arith.constant 0 : i32
    %c0_i32_0 = arith.constant 0 : i32
    %c0_i32_1 = arith.constant 0 : i32
    return %c0_i32, %c0_i32_0 : i32, i32
  }
  func.func @transform_6(%arg0: i32) -> (i32, i32) {
    %c0_i32 = arith.constant 0 : i32
    %c0_i32_0 = arith.constant 0 : i32
    %c0_i32_1 = arith.constant 0 : i32
    return %c0_i32, %c0_i32_0 : i32, i32
  }
  func.func @transform_7(%arg0: i32) -> (i32, i32) {
    %c0_i32 = arith.constant 0 : i32
    %c0_i32_0 = arith.constant 0 : i32
    %c0_i32_1 = arith.constant 0 : i32
    return %c0_i32, %c0_i32_0 : i32, i32
  }
  func.func @transform_8(%arg0: i32) -> (i32, i32) {
    %c0_i32 = arith.constant 0 : i32
    %c0_i32_0 = arith.constant 0 : i32
    %c0_i32_1 = arith.constant 0 : i32
    return %c0_i32, %c0_i32_0 : i32, i32
  }
  func.func @transform_9(%arg0: i32) -> (i32, i32) {
    %c0_i32 = arith.constant 0 : i32
    %c0_i32_0 = arith.constant 0 : i32
    %c0_i32_1 = arith.constant 0 : i32
    return %c0_i32, %c0_i32_0 : i32, i32
  }
  func.func @transform_10(%arg0: i32) -> (i32, i32) {
    %c0_i32 = arith.constant 0 : i32
    %c0_i32_0 = arith.constant 0 : i32
    %c0_i32_1 = arith.constant 0 : i32
    return %c0_i32, %c0_i32_0 : i32, i32
  }
  func.func @transform_11(%arg0: i32) -> (i32, i32, i32) {
    %c0_i32 = arith.constant 0 : i32
    %c0_i32_0 = arith.constant 0 : i32
    %c0_i32_1 = arith.constant 0 : i32
    return %arg0, %c0_i32, %c0_i32_0 : i32, i32, i32
  }
}

module attributes {stable_mosaic.version = 11 : i64} {
  func.func @_ca_fused_kernel(%arg0: i32, %arg1: memref<1x4x256xf32, #tpu.memory_space<vmem>>, %arg2: memref<256x16xbf16, #tpu.memory_space<vmem>>, %arg3: memref<256x16xbf16, #tpu.memory_space<vmem>>, %arg4: memref<16x256xbf16, #tpu.memory_space<vmem>>, %arg5: memref<16x256xbf16, #tpu.memory_space<vmem>>, %arg6: memref<8x4xf32, #tpu.memory_space<vmem>>, %arg7: memref<8x1xf32, #tpu.memory_space<vmem>>, %arg8: memref<4x8xf32, #tpu.memory_space<vmem>>, %arg9: memref<4x1xf32, #tpu.memory_space<vmem>>, %arg10: memref<4x8xf32, #tpu.memory_space<vmem>>, %arg11: memref<4x1xf32, #tpu.memory_space<vmem>>, %arg12: memref<1x4x256xf32, #tpu.memory_space<vmem>>) attributes {dimension_semantics = [#tpu.dimension_semantics<parallel>], iteration_bounds = array<i64: 2>, scalar_prefetch = 0 : i64, scratch_operands = 0 : i64, tpu.core_type = #tpu.core_type<tc>, window_params = [{transform_indices = @transform_0, window_bounds = array<i64: 1, 4, 256>}, {pipeline_mode = #tpu.pipeline_mode<synchronous>, transform_indices = @transform_1, window_bounds = array<i64: 256, 16>}, {pipeline_mode = #tpu.pipeline_mode<synchronous>, transform_indices = @transform_2, window_bounds = array<i64: 256, 16>}, {pipeline_mode = #tpu.pipeline_mode<synchronous>, transform_indices = @transform_3, window_bounds = array<i64: 16, 256>}, {pipeline_mode = #tpu.pipeline_mode<synchronous>, transform_indices = @transform_4, window_bounds = array<i64: 16, 256>}, {pipeline_mode = #tpu.pipeline_mode<synchronous>, transform_indices = @transform_5, window_bounds = array<i64: 8, 4>}, {pipeline_mode = #tpu.pipeline_mode<synchronous>, transform_indices = @transform_6, window_bounds = array<i64: 8, 1>}, {pipeline_mode = #tpu.pipeline_mode<synchronous>, transform_indices = @transform_7, window_bounds = array<i64: 4, 8>}, {pipeline_mode = #tpu.pipeline_mode<synchronous>, transform_indices = @transform_8, window_bounds = array<i64: 4, 1>}, {pipeline_mode = #tpu.pipeline_mode<synchronous>, transform_indices = @transform_9, window_bounds = array<i64: 4, 8>}, {pipeline_mode = #tpu.pipeline_mode<synchronous>, transform_indices = @transform_10, window_bounds = array<i64: 4, 1>}, {transform_indices = @transform_11, window_bounds = array<i64: 1, 4, 256>}]} {
    %c0 = arith.constant 0 : index
    %c0_0 = arith.constant 0 : index
    %c0_1 = arith.constant 0 : index
    %0 = vector.load %arg1[%c0, %c0_0, %c0_1] : memref<1x4x256xf32, #tpu.memory_space<vmem>>, vector<1x4x256xf32>
    %1 = vector.shape_cast %0 : vector<1x4x256xf32> to vector<4x256xf32>
    %2 = arith.truncf %1 : vector<4x256xf32> to vector<4x256xbf16>
    %c0_2 = arith.constant 0 : index
    %c0_3 = arith.constant 0 : index
    %3 = vector.load %arg2[%c0_2, %c0_3] : memref<256x16xbf16, #tpu.memory_space<vmem>>, vector<256x16xbf16>
    %cst = arith.constant dense<0.000000e+00> : vector<4x16xf32>
    %4 = tpu.matmul %2, %3, %cst {dimension_numbers = #tpu.dot_dimension_numbers<[1], [0], [0], [1], [0, 0, 1, 1], [], []>} : vector<4x256xbf16>, vector<256x16xbf16>, vector<4x16xf32> -> vector<4x16xf32>
    %cst_4 = arith.constant 6.250000e-02 : f32
    %5 = vector.broadcast %cst_4 : f32 to vector<4x16xf32>
    %6 = arith.mulf %4, %5 : vector<4x16xf32>
    %c0_5 = arith.constant 0 : index
    %c0_6 = arith.constant 0 : index
    %7 = vector.load %arg3[%c0_5, %c0_6] : memref<256x16xbf16, #tpu.memory_space<vmem>>, vector<256x16xbf16>
    %cst_7 = arith.constant dense<0.000000e+00> : vector<4x16xf32>
    %8 = tpu.matmul %2, %7, %cst_7 {dimension_numbers = #tpu.dot_dimension_numbers<[1], [0], [0], [1], [0, 0, 1, 1], [], []>} : vector<4x256xbf16>, vector<256x16xbf16>, vector<4x16xf32> -> vector<4x16xf32>
    %cst_8 = arith.constant 6.250000e-02 : f32
    %9 = vector.broadcast %cst_8 : f32 to vector<4x16xf32>
    %10 = arith.mulf %8, %9 : vector<4x16xf32>
    %c0_9 = arith.constant 0 : index
    %c0_10 = arith.constant 0 : index
    %11 = vector.load %arg6[%c0_9, %c0_10] : memref<8x4xf32, #tpu.memory_space<vmem>>, vector<8x4xf32>
    %c0_11 = arith.constant 0 : index
    %c0_12 = arith.constant 0 : index
    %12 = vector.load %arg7[%c0_11, %c0_12] : memref<8x1xf32, #tpu.memory_space<vmem>>, vector<8x1xf32>
    %c0_13 = arith.constant 0 : index
    %c0_14 = arith.constant 0 : index
    %13 = vector.load %arg8[%c0_13, %c0_14] : memref<4x8xf32, #tpu.memory_space<vmem>>, vector<4x8xf32>
    %c0_15 = arith.constant 0 : index
    %c0_16 = arith.constant 0 : index
    %14 = vector.load %arg9[%c0_15, %c0_16] : memref<4x1xf32, #tpu.memory_space<vmem>>, vector<4x1xf32>
    %c0_17 = arith.constant 0 : index
    %c0_18 = arith.constant 0 : index
    %15 = vector.load %arg10[%c0_17, %c0_18] : memref<4x8xf32, #tpu.memory_space<vmem>>, vector<4x8xf32>
    %c0_19 = arith.constant 0 : index
    %c0_20 = arith.constant 0 : index
    %16 = vector.load %arg11[%c0_19, %c0_20] : memref<4x1xf32, #tpu.memory_space<vmem>>, vector<4x1xf32>
    %cst_21 = arith.constant dense<0.000000e+00> : vector<8x16xf32>
    %17 = tpu.matmul %11, %6, %cst_21 {dimension_numbers = #tpu.dot_dimension_numbers<[1], [0], [0], [1], [0, 0, 1, 1], [], []>, precision = #tpu.contract_precision<fp32>} : vector<8x4xf32>, vector<4x16xf32>, vector<8x16xf32> -> vector<8x16xf32>
    %18 = vector.broadcast %12 : vector<8x1xf32> to vector<8x16xf32>
    %19 = arith.addf %17, %18 : vector<8x16xf32>
    %cst_22 = arith.constant 3.000000e+00 : f32
    %20 = vector.broadcast %cst_22 : f32 to vector<8x16xf32>
    %21 = arith.addf %19, %20 : vector<8x16xf32>
    %cst_23 = arith.constant 0.000000e+00 : f32
    %cst_24 = arith.constant 6.000000e+00 : f32
    %22 = vector.broadcast %cst_23 : f32 to vector<8x16xf32>
    %23 = arith.maximumf %22, %21 : vector<8x16xf32>
    %24 = vector.broadcast %cst_24 : f32 to vector<8x16xf32>
    %25 = arith.minimumf %24, %23 : vector<8x16xf32>
    %26 = arith.mulf %19, %25 : vector<8x16xf32>
    %cst_25 = arith.constant 0.166666672 : f32
    %27 = vector.broadcast %cst_25 : f32 to vector<8x16xf32>
    %28 = arith.mulf %26, %27 : vector<8x16xf32>
    %cst_26 = arith.constant dense<0.000000e+00> : vector<8x16xf32>
    %29 = tpu.matmul %11, %10, %cst_26 {dimension_numbers = #tpu.dot_dimension_numbers<[1], [0], [0], [1], [0, 0, 1, 1], [], []>, precision = #tpu.contract_precision<fp32>} : vector<8x4xf32>, vector<4x16xf32>, vector<8x16xf32> -> vector<8x16xf32>
    %30 = vector.broadcast %12 : vector<8x1xf32> to vector<8x16xf32>
    %31 = arith.addf %29, %30 : vector<8x16xf32>
    %cst_27 = arith.constant 3.000000e+00 : f32
    %32 = vector.broadcast %cst_27 : f32 to vector<8x16xf32>
    %33 = arith.addf %31, %32 : vector<8x16xf32>
    %cst_28 = arith.constant 0.000000e+00 : f32
    %cst_29 = arith.constant 6.000000e+00 : f32
    %34 = vector.broadcast %cst_28 : f32 to vector<8x16xf32>
    %35 = arith.maximumf %34, %33 : vector<8x16xf32>
    %36 = vector.broadcast %cst_29 : f32 to vector<8x16xf32>
    %37 = arith.minimumf %36, %35 : vector<8x16xf32>
    %38 = arith.mulf %31, %37 : vector<8x16xf32>
    %cst_30 = arith.constant 0.166666672 : f32
    %39 = vector.broadcast %cst_30 : f32 to vector<8x16xf32>
    %40 = arith.mulf %38, %39 : vector<8x16xf32>
    %cst_31 = arith.constant dense<0.000000e+00> : vector<4x16xf32>
    %41 = tpu.matmul %13, %28, %cst_31 {dimension_numbers = #tpu.dot_dimension_numbers<[1], [0], [0], [1], [0, 0, 1, 1], [], []>, precision = #tpu.contract_precision<fp32>} : vector<4x8xf32>, vector<8x16xf32>, vector<4x16xf32> -> vector<4x16xf32>
    %42 = vector.broadcast %14 : vector<4x1xf32> to vector<4x16xf32>
    %43 = arith.addf %41, %42 : vector<4x16xf32>
    %44 = arith.negf %43 : vector<4x16xf32>
    %45 = math.exp %44 : vector<4x16xf32>
    %cst_32 = arith.constant 1.000000e+00 : f32
    %46 = vector.broadcast %cst_32 : f32 to vector<4x16xf32>
    %47 = arith.addf %46, %45 : vector<4x16xf32>
    %48 = arith.divf %46, %47 : vector<4x16xf32>
    %cst_33 = arith.constant dense<0.000000e+00> : vector<4x16xf32>
    %49 = tpu.matmul %15, %40, %cst_33 {dimension_numbers = #tpu.dot_dimension_numbers<[1], [0], [0], [1], [0, 0, 1, 1], [], []>, precision = #tpu.contract_precision<fp32>} : vector<4x8xf32>, vector<8x16xf32>, vector<4x16xf32> -> vector<4x16xf32>
    %50 = vector.broadcast %16 : vector<4x1xf32> to vector<4x16xf32>
    %51 = arith.addf %49, %50 : vector<4x16xf32>
    %52 = arith.negf %51 : vector<4x16xf32>
    %53 = math.exp %52 : vector<4x16xf32>
    %cst_34 = arith.constant 1.000000e+00 : f32
    %54 = vector.broadcast %cst_34 : f32 to vector<4x16xf32>
    %55 = arith.addf %54, %53 : vector<4x16xf32>
    %56 = arith.divf %54, %55 : vector<4x16xf32>
    %57 = arith.truncf %48 : vector<4x16xf32> to vector<4x16xbf16>
    %c0_35 = arith.constant 0 : index
    %c0_36 = arith.constant 0 : index
    %58 = vector.load %arg4[%c0_35, %c0_36] : memref<16x256xbf16, #tpu.memory_space<vmem>>, vector<16x256xbf16>
    %cst_37 = arith.constant dense<0.000000e+00> : vector<4x256xf32>
    %59 = tpu.matmul %57, %58, %cst_37 {dimension_numbers = #tpu.dot_dimension_numbers<[1], [0], [0], [1], [0, 0, 1, 1], [], []>} : vector<4x16xbf16>, vector<16x256xbf16>, vector<4x256xf32> -> vector<4x256xf32>
    %c0_38 = arith.constant 0 : index
    %c0_39 = arith.constant 0 : index
    %c0_40 = arith.constant 0 : index
    %60 = vector.load %arg1[%c0_38, %c0_39, %c0_40] : memref<1x4x256xf32, #tpu.memory_space<vmem>>, vector<1x4x256xf32>
    %61 = vector.shape_cast %60 : vector<1x4x256xf32> to vector<4x256xf32>
    %62 = arith.mulf %61, %59 : vector<4x256xf32>
    %63 = arith.truncf %56 : vector<4x16xf32> to vector<4x16xbf16>
    %c0_41 = arith.constant 0 : index
    %c0_42 = arith.constant 0 : index
    %64 = vector.load %arg5[%c0_41, %c0_42] : memref<16x256xbf16, #tpu.memory_space<vmem>>, vector<16x256xbf16>
    %cst_43 = arith.constant dense<0.000000e+00> : vector<4x256xf32>
    %65 = tpu.matmul %63, %64, %cst_43 {dimension_numbers = #tpu.dot_dimension_numbers<[1], [0], [0], [1], [0, 0, 1, 1], [], []>} : vector<4x16xbf16>, vector<16x256xbf16>, vector<4x256xf32> -> vector<4x256xf32>
    %66 = arith.mulf %62, %65 : vector<4x256xf32>
    %c0_44 = arith.constant 0 : index
    %c0_45 = arith.constant 0 : index
    %c0_46 = arith.constant 0 : index
    %67 = vector.load %arg12[%c0_44, %c0_45, %c0_46] : memref<1x4x256xf32, #tpu.memory_space<vmem>>, vector<1x4x256xf32>
    %68 = vector.shape_cast %67 : vector<1x4x256xf32> to vector<4x256xf32>
    %69 = vector.shape_cast %66 : vector<4x256xf32> to vector<1x4x256xf32>
    tpu.vector_store %arg12[%c0_44, %c0_45, %c0_46], %69 {strides = array<i32>} : memref<1x4x256xf32, #tpu.memory_space<vmem>>, vector<1x4x256xf32>,
    return
  }
  func.func @transform_0(%arg0: i32) -> (i32, i32, i32) {
    %c0_i32 = arith.constant 0 : i32
    %c0_i32_0 = arith.constant 0 : i32
    %c0_i32_1 = arith.constant 0 : i32
    return %arg0, %c0_i32, %c0_i32_0 : i32, i32, i32
  }
  func.func @transform_1(%arg0: i32) -> (i32, i32) {
    %c0_i32 = arith.constant 0 : i32
    %c0_i32_0 = arith.constant 0 : i32
    %c0_i32_1 = arith.constant 0 : i32
    return %c0_i32, %c0_i32_0 : i32, i32
  }
  func.func @transform_2(%arg0: i32) -> (i32, i32) {
    %c0_i32 = arith.constant 0 : i32
    %c0_i32_0 = arith.constant 0 : i32
    %c0_i32_1 = arith.constant 0 : i32
    return %c0_i32, %c0_i32_0 : i32, i32
  }
  func.func @transform_3(%arg0: i32) -> (i32, i32) {
    %c0_i32 = arith.constant 0 : i32
    %c0_i32_0 = arith.constant 0 : i32
    %c0_i32_1 = arith.constant 0 : i32
    return %c0_i32, %c0_i32_0 : i32, i32
  }
  func.func @transform_4(%arg0: i32) -> (i32, i32) {
    %c0_i32 = arith.constant 0 : i32
    %c0_i32_0 = arith.constant 0 : i32
    %c0_i32_1 = arith.constant 0 : i32
    return %c0_i32, %c0_i32_0 : i32, i32
  }
  func.func @transform_5(%arg0: i32) -> (i32, i32) {
    %c0_i32 = arith.constant 0 : i32
    %c0_i32_0 = arith.constant 0 : i32
    %c0_i32_1 = arith.constant 0 : i32
    return %c0_i32, %c0_i32_0 : i32, i32
  }
  func.func @transform_6(%arg0: i32) -> (i32, i32) {
    %c0_i32 = arith.constant 0 : i32
    %c0_i32_0 = arith.constant 0 : i32
    %c0_i32_1 = arith.constant 0 : i32
    return %c0_i32, %c0_i32_0 : i32, i32
  }
  func.func @transform_7(%arg0: i32) -> (i32, i32) {
    %c0_i32 = arith.constant 0 : i32
    %c0_i32_0 = arith.constant 0 : i32
    %c0_i32_1 = arith.constant 0 : i32
    return %c0_i32, %c0_i32_0 : i32, i32
  }
  func.func @transform_8(%arg0: i32) -> (i32, i32) {
    %c0_i32 = arith.constant 0 : i32
    %c0_i32_0 = arith.constant 0 : i32
    %c0_i32_1 = arith.constant 0 : i32
    return %c0_i32, %c0_i32_0 : i32, i32
  }
  func.func @transform_9(%arg0: i32) -> (i32, i32) {
    %c0_i32 = arith.constant 0 : i32
    %c0_i32_0 = arith.constant 0 : i32
    %c0_i32_1 = arith.constant 0 : i32
    return %c0_i32, %c0_i32_0 : i32, i32
  }
  func.func @transform_10(%arg0: i32) -> (i32, i32) {
    %c0_i32 = arith.constant 0 : i32
    %c0_i32_0 = arith.constant 0 : i32
    %c0_i32_1 = arith.constant 0 : i32
    return %c0_i32, %c0_i32_0 : i32, i32
  }
  func.func @transform_11(%arg0: i32) -> (i32, i32, i32) {
    %c0_i32 = arith.constant 0 : i32
    %c0_i32_0 = arith.constant 0 : i32
    %c0_i32_1 = arith.constant 0 : i32
    return %arg0, %c0_i32, %c0_i32_0 : i32, i32, i32
  }
}

</mosaic_0001>

<bundles_post_ra>
// kernel: tpu_custom_call.1
= control target key start
LH: loop header
LB: loop body
LE: loop exit
PB: predicated region body
PF: predicated region fallthrough
CT: control target
= control target key end

     0   :  { %16 = vsyncpa [#allocation3], 0  ;;  %s3634_s0 = inlined_call_operand.vmem [shape: f32[2,4,256], index: 0, kind: input, shape index: {}]   ;;  %s3635_s1 = inlined_call_operand.vmem [shape: bf16[256,16], index: 1, kind: input, shape index: {}]   ;;  %s3636_s2 = inlined_call_operand.vmem [shape: bf16[256,16], index: 2, kind: input, shape index: {}]   ;;  %s3637_s3 = inlined_call_operand.vmem [shape: bf16[16,256], index: 3, kind: input, shape index: {}]   ;;  %s3638_s4 = inlined_call_operand.vmem [shape: bf16[16,256], index: 4, kind: input, shape index: {}]   ;;  %s3639_s5 = inlined_call_operand.vmem [shape: f32[8,4], index: 5, kind: input, shape index: {}]   ;;  %s3640_s6 = inlined_call_operand.vmem [shape: f32[8,1], index: 6, kind: input, shape index: {}]   ;;  %s3641_s7 = inlined_call_operand.vmem [shape: f32[4,8], index: 7, kind: input, shape index: {}]   ;;  %s3642_s8 = inlined_call_operand.vmem [shape: f32[4,1], index: 8, kind: input, shape index: {}]   ;;  %s3643_s9 = inlined_call_operand.vmem [shape: f32[4,8], index: 9, kind: input, shape index: {}]   ;;  %s3644_s10 = inlined_call_operand.vmem [shape: f32[4,1], index: 10, kind: input, shape index: {}]   ;;  %s3645_s11 = inlined_call_operand.hbm [shape: f32[2,4,256], index: 11, kind: output, shape index: {}]  }
   0x1   :  { %18 = vsyncpa [#allocation3 + $0x1], 0  ;;  %s3304_s17 = smov 0   ;;  %s3306_s18 = smov 0  }
   0x2   :  { %s3308_s19 = smov 0   ;;  %s3310_s20 = smov 0  }
   0x3 LB: > { %3647 = sst [smem:[#allocation5_spill]] %s3234_s19  ;;  %s3325_s21 = sadd.s32 4294967295, %s3238_s20   ;;  %s3238_s20 = sphi %s3310_s20, %s3655_s20   ;;  %s3234_s19 = sphi %s3308_s19, %s3652_s19   ;;  %s3230_s18 = sphi %s3306_s18, %s3654_s18   ;;  %s3226_s17 = sphi %s3304_s17, %s3653_s17  }
   0x4   : > { %s2775_s22 = sadd.s32 4294967294, %s3238_s20   ;;  %s3329_s23 = sadd.s32 1, %s3238_s20  }
   0x5   : > { %s267_s24 = sadd.s32 1, %s3234_s19  ;;  %s264_s25 = ssub.s32 %s3238_s20, %s3329_s23 }
   0x6   : > { %p277_p0 = scmp.ne.s32.totalorder %s3234_s19, %s3230_s18  ;;  %p265_p1 = scmp.eq.s32.totalorder %s264_s25, 0 }
   0x7   : > { %p278_p2 = scmp.eq.s32.totalorder %s3325_s21, 1  ;;  %p283_p3 = scmp.ne.s32.totalorder %s3230_s18, %s3226_s17 }
   0x8   : > { %p284_p4 = scmp.eq.s32.totalorder %s2775_s22, 1  ;;  %p2778_p7 = scmp.ge.s32.totalorder %s3238_s20, 1 }
   0x9   : > { %s3340_s26 = scalar_select %p265_p1, %s3234_s19, %s267_s24  }
   0xa   : > { %p3342_p5 = por %p278_p2, %p277_p0  ;;  %p3346_p6 = por %p284_p4, %p283_p3 }
   0xb   : > { %3648 = sst [smem:[#allocation6_spill]] %s3340_s26  ;;  %p340_p8 = scmp.lt.s32.totalorder %s3238_s20, 3 }
   0xd   : > { %p341_p9 = pnand %p2778_p7, %p340_p8 }
   0xe   : > { %v3129_v0 = vld [vmem:[%s3635_s1 + $0x40] sm:$0xff] (!%p341_p9)   ;;  %v3133_v4 = vld [vmem:[%s3635_s1 + $0x48] sm:$0xff] (!%p341_p9)   ;;  %v3137_v8 = vld [vmem:[%s3635_s1 + $0x50] sm:$0xff] (!%p341_p9)   ;;  %p380_p10 = scmp.lt.s32.totalorder (!%p341_p9), %s3325_s21, 1  ;;  %v3240_v36 = vmov (!%p341_p9), 0.0   ;;  %vm3241_vm0 = vmmov (!%p341_p9), 0  }
   0xf   : > { %344 = sbr.rel (%p341_p9) target bundleno = 1051 (0x41b), region = 64  ;;  %v3130_v1 = vld [vmem:[%s3636_s2 + $0x40] sm:$0xff] (!%p341_p9)   ;;  %2829 = vmatprep.subr.bf16.mxu0 (!%p341_p9), %v3129_v0  ;;  %v3134_v5 = vld [vmem:[%s3636_s2 + $0x48] sm:$0xff] (!%p341_p9)   ;;  %v3138_v9 = vld [vmem:[%s3636_s2 + $0x50] sm:$0xff] (!%p341_p9)   ;;  %v3242_v38 = vmov (!%p341_p9), 0   ;;  %vm741_vm1 = vcmask (!%p341_p9), 31744  }
  0x10   : > { %v3131_v2 = vld [vmem:[%s3635_s1] sm:$0xff] (!%p341_p9)   ;;  %2851 = vmatprep.subr.bf16.mxu1 (!%p341_p9), %v3130_v1  ;;  %v3135_v6 = vld [vmem:[%s3635_s1 + $0x8] sm:$0xff] (!%p341_p9)   ;;  %v3139_v10 = vld [vmem:[%s3635_s1 + $0x10] sm:$0xff] (!%p341_p9)   ;;  %3127 = vset.pattern.permute.xlu0 (!%p341_p9), %v3242_v38  ;;  %vm745_vm2 = vcmask (!%p341_p9), 1043456   ;;  %vm1659_vm3 = vcmask (!%p341_p9), 64512   ;;  %vm2588_vm4 = vcmask (!%p341_p9), 130048  }
  0x11   : > { %v3132_v3 = vld [vmem:[%s3636_s2] sm:$0xff] (!%p341_p9)   ;;  %2830 = vmatpush3.bf16.msra.mxu0 (!%p341_p9), %v3131_v2  ;;  %v3136_v7 = vld [vmem:[%s3636_s2 + $0x8] sm:$0xff] (!%p341_p9)   ;;  %v3140_v11 = vld [vmem:[%s3636_s2 + $0x10] sm:$0xff] (!%p341_p9)   ;;  %3128 = vset.pattern.permute.xlu1 (!%p341_p9), %v3242_v38  ;;  %s2828_s26 = sshll.u32 (!%p341_p9), %s3325_s21, 7 }
  0x12   : > { %2852 = vmatpush3.bf16.msra.mxu1 (!%p341_p9), %v3132_v3  ;;  %2831 = vmatprep.subr.bf16.mxu0 (!%p341_p9), %v3133_v4  ;;  %v3141_v12 = vld [vmem:[%s3635_s1 + $0x58] sm:$0xff] (!%p341_p9)   ;;  %v3145_v16 = vld [vmem:[%s3635_s1 + $0x60] sm:$0xff] (!%p341_p9)   ;;  %v3149_v20 = vld [vmem:[%s3635_s1 + $0x68] sm:$0xff] (!%p341_p9)   ;;  %s3592_s25 = scalar_lea.hbm (!%p341_p9), %s3645_s11, %s2828_s26 }
  0x13   : > { %2853 = vmatprep.subr.bf16.mxu1 (!%p341_p9), %v3134_v5  ;;  %v3142_v13 = vld [vmem:[%s3636_s2 + $0x58] sm:$0xff] (!%p341_p9)   ;;  %v3146_v17 = vld [vmem:[%s3636_s2 + $0x60] sm:$0xff] (!%p341_p9)   ;;  %v3150_v21 = vld [vmem:[%s3636_s2 + $0x68] sm:$0xff] (!%p341_p9)  }
  0x14   : > { %v3143_v14 = vld [vmem:[%s3635_s1 + $0x18] sm:$0xff] (!%p341_p9)   ;;  %v3147_v18 = vld [vmem:[%s3635_s1 + $0x20] sm:$0xff] (!%p341_p9)   ;;  %v3151_v22 = vld [vmem:[%s3635_s1 + $0x28] sm:$0xff] (!%p341_p9)  }
  0x15   : > { %2832 = vmatpush3.bf16.msra.mxu0 (!%p341_p9), %v3135_v6  ;;  %v3144_v15 = vld [vmem:[%s3636_s2 + $0x18] sm:$0xff] (!%p341_p9)   ;;  %v3148_v19 = vld [vmem:[%s3636_s2 + $0x20] sm:$0xff] (!%p341_p9)   ;;  %v3152_v23 = vld [vmem:[%s3636_s2 + $0x28] sm:$0xff] (!%p341_p9)  }
  0x16   : > { %2854 = vmatpush3.bf16.msra.mxu1 %v3136_v7  ;;  %2833 = vmatprep.subr.bf16.mxu0 %v3137_v8  ;;  %s381_s16 = scalar_select %p380_p10, %s3325_s21, 1  ;;  %v3153_v24 = vld [vmem:[%s3635_s1 + $0x70] sm:$0xff]   ;;  %v3157_v28 = vld [vmem:[%s3635_s1 + $0x78] sm:$0xff]   ;;  %v731_v37 = vld [vmem:[%s3640_s6] sm:$0xff] }
  0x17   : > { %2855 = vmatprep.subr.bf16.mxu1 %v3138_v9  ;;  %v3154_v25 = vld [vmem:[%s3636_s2 + $0x70] sm:$0xff]   ;;  %v3158_v29 = vld [vmem:[%s3636_s2 + $0x78] sm:$0xff]   ;;  %738 = vperm.xlu0 %3127, %v731_v37   ;;  %v733_v39 = vld [vmem:[%s3642_s8] sm:$0xf]  ;;  %s3243_s21 = smov [#allocation2]  }
  0x18   : > { %v3155_v26 = vld [vmem:[%s3635_s1 + $0x30] sm:$0xff]   ;;  %s2827_s15 = sshll.u32 %s381_s16, 3  ;;  %v3159_v30 = vld [vmem:[%s3635_s1 + $0x38] sm:$0xff]   ;;  %v730_v40 = vld [vmem:[%s3639_s5] sm:$0xff]  ;;  %s377_s16 = sand.u32 1, %s3230_s18  }
  0x19   : > { %2834 = vmatpush3.bf16.msra.mxu0 %v3139_v10  ;;  %v3156_v27 = vld [vmem:[%s3636_s2 + $0x30] sm:$0xff]   ;;  %s384_s13 = scalar_lea.vmem %s3634_s0, %s2827_s15  ;;  %v3160_v31 = vld [vmem:[%s3636_s2 + $0x38] sm:$0xff]   ;;  %v743_v41 = vsel %vm741_vm1, %v730_v40, 0  ;;  %v735_v7 = vld [vmem:[%s3644_s10] sm:$0xf]  ;;  %s2779_s14 = sshll.u32 %s377_s16, 3 }
  0x1a   : > { %2856 = vmatpush3.bf16.msra.mxu1 %v3140_v11  ;;  %2835 = vmatprep.subr.bf16.mxu0 %v3141_v12  ;;  %v3453_v32 = vld [vmem:[%s384_s13] sm:$0xff]  ;;  %v3476_v42 = vand.u32 4294901760, %v743_v41  ;;  %s379_s22 = scalar_lea.vmem [#allocation2], %s2779_s14  ;;  %s2702_s29 = scalar_lea.sflag [#allocation3], %s377_s16 }
  0x1b   : > { %2857 = vmatprep.subr.bf16.mxu1 %v3142_v13  ;;  %v388_v33 = vcombine.high %v3453_v32, %v3453_v32  ;;  %v390_v34 = vpack.c.bf16 %v3453_v32, %v3453_v32  ;;  %1656 = vperm.xlu0 %3127, %v733_v39   ;;  %v732_v8 = vld [vmem:[%s3641_s7] sm:$0xf]  ;;  %s2716_s19 = sshll.u32 %s379_s22, 4  ;;  %s3180_s12 = sshll.u32 %s3243_s21, 4  ;;  %s3594_s19 = int_to_ptr.vmem [resolvable:$true] %s2716_s19  ;;  %s3181_s12 = int_to_ptr.vmem [resolvable:$false] %s3180_s12 }
  0x1c   : > { %v816_v43 = vsub.f32 %v743_v41, %v3476_v42  ;;  %2117 = vperm.xlu1 %3128, %v735_v7   ;;  %v734_v9 = vld [vmem:[%s3643_s9] sm:$0xf]  ;;  %v1661_v10 = vsel %vm1659_vm3, %v732_v8, 0  ;;  %s3176_s30 = scalar_lea.vmem %s3594_s19, 128  ;;  %s3182_s13 = scalar_lea.vmem %s3181_s12, 256 }
  0x1d   : > { %2836 = vmatpush3.bf16.msra.mxu0 %v3143_v14  ;;  %v391_v35 = vpack.c.bf16 %v388_v33, %v388_v33  ;;  %v2121_v11 = vsel %vm1659_vm3, %v734_v9, 0  ;;  %v3530_v12 = vand.u32 4294901760, %v1661_v10  ;;  %p3177_p11 = scmp.ne.s32.totalorder %s3594_s19, %s3176_s30  ;;  %p3183_p0 = scmp.lt.s32.totalorder %s3594_s19, %s3181_s12 }
  0x1e   : > { %2858 = vmatpush3.bf16.msra.mxu1 %v3144_v15  ;;  %2837 = vmatprep.subr.bf16.mxu0 %v3145_v16  ;;  %v817_v44 = vand.u32 4294901760, %v816_v43  ;;  %v3532_v13 = vand.u32 4294901760, %v2121_v11  ;;  %p3184_p1 = scmp.lt.s32.totalorder %s3182_s13, %s3176_s30 }
  0x1f   : > { %2859 = vmatprep.subr.bf16.mxu1 %v3146_v17  ;;  %552 = vmatprep.mubr.bf16.mxu0 %v391_v35  ;;  %v1730_v16 = vsub.f32 %v1661_v10, %v3530_v12  ;;  %p3178_p12 = pnand %p3177_p11, %p3342_p5 }
  0x20   : > { %721 = vmatprep.mubr.bf16.mxu1 %v391_v35  ;;  %v818_v53 = vsub.f32 %v816_v43, %v817_v44  ;;  %p3185_p2 = por %p3184_p1, %p3183_p0 }
  0x21   : > { %2838 = vmatpush3.bf16.msra.mxu0 %v3147_v18  ;;  %p3179_p13 = pneg %p3178_p12 }
  0x22   : > { %2860 = vmatpush3.bf16.msra.mxu1 %v3148_v19  ;;  %2839 = vmatprep.subr.bf16.mxu0 %v3149_v20  ;;  %v819_v60 = vand.u32 4294901760, %v818_v53  ;;  %v2190_v20 = vsub.f32 %v2121_v11, %v3532_v13  ;;  %v3167_v53 = vld [vmem:[%s3638_s4 + $0x4] ss:$8 sps:$4 sm:$0xff]  }
  0x23   : > { %2861 = vmatprep.subr.bf16.mxu1 %v3150_v21  ;;  %p3186_p3 = pnand %p3185_p2, %p3179_p13 }
  0x25   : > { %2840 = vmatpush3.bf16.msra.mxu0 %v3151_v22 }
  0x26   : > { %2862 = vmatpush3.bf16.msra.mxu1 %v3152_v23  ;;  %2841 = vmatprep.subr.bf16.mxu0 %v3153_v24 }
  0x27   : > { %2863 = vmatprep.subr.bf16.mxu1 %v3154_v25  ;;  %v1731_v25 = vand.u32 4294901760, %v1730_v16 }
  0x29   : > { %2842 = vmatpush3.bf16.msra.mxu0 %v3155_v26 }
  0x2a   : > { %2864 = vmatpush3.bf16.msra.mxu1 %v3156_v27  ;;  %2843 = vmatprep.subr.bf16.mxu0 %v3157_v28  ;;  %v2191_v27 = vand.u32 4294901760, %v2190_v20 }
  0x2b   : > { %2865 = vmatprep.subr.bf16.mxu1 %v3158_v29 }
  0x2d   : > { %2844 = vmatpush3.bf16.msra.mxu0 %v3159_v30 }
  0x2e   : > { %2866 = vmatpush3.bf16.msra.mxu1 %v3160_v31  ;;  %2921 = vmatprep.subr.mxu0 %v3240_v36  ;;  %v1732_v31 = vsub.f32 %v1730_v16, %v1731_v25 }
  0x2f   : > { %2951 = vmatprep.subr.mxu1 %v3240_v36 }
  0x30   : > { %553 = vmatmul.mubr.bf16.vlgmr.msra.gmra.mrb[0].mxu0 %v390_v34  ;;  %v1733_v40 = vand.u32 4294901760, %v1732_v31 }
  0x31   : > { %722 = vmatmul.mubr.bf16.vlgmr.msra.gmra.mrb[0].mxu1 %v390_v34  ;;  %2923 = vmatprep.mubr.msk.f32.mxu0 %vm3241_vm0, %v3240_v36  ;;  %v2192_v34 = vsub.f32 %v2190_v20, %v2191_v27 }
  0x32   : > { %2953 = vmatprep.mubr.msk.f32.mxu1 %vm3241_vm0, %v3240_v36 }
  0x96   : > { %v739_v14 = vpop.permute.xlu0 %738 }
 0x103   : > { %v2845_v45 = vpop.f32.mrb[0].mxu0 }
 0x104   : > { %v2867_v46 = vpop.f32.mrb[0].mxu1  ;;  %v2846_v47 = vpop.f32.mrb[1].mxu0 }
 0x105   : > { %v2868_v48 = vpop.f32.mrb[1].mxu1  ;;  %v2847_v49 = vadd.f32 %v2846_v47, %v2845_v45  ;;  %v2848_v51 = vpop.f32.mrb[2].mxu0 }
 0x106   : > { %v2869_v50 = vadd.f32 %v2868_v48, %v2867_v46  ;;  %v2870_v52 = vpop.f32.mrb[2].mxu1  ;;  %v2849_v54 = vpop.f32.mrb[3].mxu0 }
 0x107   : > { %v2871_v55 = vpop.f32.mrb[3].mxu1  ;;  %v560_v56 = vmul.f32 0.0625, %v2847_v49  ;;  %v3164_v52 = vld [vmem:[%s3637_s3 + $0x4] ss:$8 sps:$4 sm:$0xff]   ;;  %v3165_v54 = vld [vmem:[%s3638_s4] ss:$8 sps:$4 sm:$0xff]  }
 0x108   : > { %v729_v57 = vmul.f32 0.0625, %v2869_v50  ;;  %v1657_v55 = vpop.permute.xlu0 %1656 }
 0x109   : > { %v747_v58 = vsel %vm745_vm2, %v560_v56, 0 }
 0x10a   : > { %v1201_v59 = vsel %vm745_vm2, %v729_v57, 0  ;;  %v750_v61 = vand.u32 4294901760, %v747_v58 }
 0x10b   : > { %v1204_v62 = vand.u32 4294901760, %v1201_v59 }
 0x10c   : > { %v827_v63 = vsub.f32 %v747_v58, %v750_v61  ;;  %2922 = vmatpush3.msra.mxu0 %v750_v61 }
 0x10d   : > { %v1281_v0 = vsub.f32 %v1201_v59, %v1204_v62  ;;  %2952 = vmatpush3.msra.mxu1 %v1204_v62  ;;  %2924 = vmatmul.mubr.f32.vlgmr.msra.gmra.mrb[4].mxu0 %v819_v60 }
 0x10e   : > { %2954 = vmatmul.mubr.f32.vlgmr.msra.gmra.mrb[4].mxu1 %v819_v60  ;;  %v828_v1 = vand.u32 4294901760, %v827_v63  ;;  %2926 = vmatprep.subr.mxu0 %v3240_v36 }
 0x10f   : > { %v1282_v2 = vand.u32 4294901760, %v1281_v0  ;;  %2956 = vmatprep.subr.mxu1 %v3240_v36  ;;  %2928 = vmatprep.mubr.msk.f32.mxu0 %vm3241_vm0, %v3240_v36 }
 0x110   : > { %2958 = vmatprep.mubr.msk.f32.mxu1 %vm3241_vm0, %v3240_v36  ;;  %v829_v3 = vsub.f32 %v827_v63, %v828_v1 }
 0x111   : > { %v1283_v4 = vsub.f32 %v1281_v0, %v1282_v2 }
 0x112   : > { %v830_v5 = vand.u32 4294901760, %v829_v3 }
 0x113   : > { %v1284_v6 = vand.u32 4294901760, %v1283_v4 }
 0x114   : > { %2927 = vmatpush3.msra.mxu0 %v830_v5 }
 0x115   : > { %2957 = vmatpush3.msra.mxu1 %v1284_v6  ;;  %2929 = vmatmul.mubr.f32.vlgmr.msra.gmra.mrb[4].mxu0 %v3476_v42 }
 0x116   : > { %2931 = vmatprep.subr.mxu0 %v3240_v36  ;;  %2959 = vmatmul.mubr.f32.vlgmr.msra.gmra.mrb[4].mxu1 %v3476_v42 }
 0x117   : > { %2961 = vmatprep.subr.mxu1 %v3240_v36  ;;  %2932 = vmatpush3.msra.mxu0 %v827_v63 }
 0x118   : > { %2962 = vmatpush3.msra.mxu1 %v1281_v0  ;;  %2933 = vmatprep.mubr.msk.f32.mxu0 %vm3241_vm0, %v3240_v36 }
 0x119   : > { %2936 = vmatprep.subr.mxu0 %v3240_v36  ;;  %2963 = vmatprep.mubr.msk.f32.mxu1 %vm3241_vm0, %v3240_v36 }
 0x11a   : > { %2966 = vmatprep.subr.mxu1 %v3240_v36 }
 0x11d   : > { %2934 = vmatmul.mubr.f32.vlgmr.msra.gmra.mrb[4].mxu0 %v816_v43 }
 0x11e   : > { %2937 = vmatpush3.msra.mxu0 %v750_v61  ;;  %2964 = vmatmul.mubr.f32.vlgmr.msra.gmra.mrb[4].mxu1 %v816_v43 }
 0x11f   : > { %2967 = vmatpush3.msra.mxu1 %v1204_v62  ;;  %2938 = vmatprep.mubr.msk.f32.mxu0 %vm3241_vm0, %v3240_v36 }
 0x120   : > { %2941 = vmatprep.subr.mxu0 %v3240_v36  ;;  %2968 = vmatprep.mubr.msk.f32.mxu1 %vm3241_vm0, %v3240_v36 }
 0x121   : > { %2971 = vmatprep.subr.mxu1 %v3240_v36 }
 0x125   : > { %2939 = vmatmul.mubr.f32.vlgmr.msra.gmra.mrb[4].mxu0 %v817_v44 }
 0x126   : > { %2942 = vmatpush3.msra.mxu0 %v828_v1  ;;  %2969 = vmatmul.mubr.f32.vlgmr.msra.gmra.mrb[4].mxu1 %v817_v44 }
 0x127   : > { %2972 = vmatpush3.msra.mxu1 %v1282_v2  ;;  %2943 = vmatprep.mubr.msk.f32.mxu0 %vm3241_vm0, %v3240_v36 }
 0x128   : > { %2946 = vmatprep.subr.mxu0 %v3240_v36  ;;  %2973 = vmatprep.mubr.msk.f32.mxu1 %vm3241_vm0, %v3240_v36 }
 0x129   : > { %2976 = vmatprep.subr.mxu1 %v3240_v36 }
 0x12d   : > { %2944 = vmatmul.mubr.f32.vlgmr.msra.gmra.mrb[4].mxu0 %v3476_v42 }
 0x12e   : > { %2947 = vmatpush3.msra.mxu0 %v750_v61  ;;  %2974 = vmatmul.mubr.f32.vlgmr.msra.gmra.mrb[4].mxu1 %v3476_v42 }
 0x12f   : > { %2977 = vmatpush3.msra.mxu1 %v1204_v62  ;;  %2948 = vmatprep.mubr.msk.f32.mxu0 %vm3241_vm0, %v3240_v36 }
 0x130   : > { %2978 = vmatprep.mubr.msk.f32.mxu1 %vm3241_vm0, %v3240_v36  ;;  %2981 = vmatprep.subr.mxu0 %v3240_v36 }
 0x131   : > { %3011 = vmatprep.subr.mxu1 %v3240_v36 }
 0x135   : > { %2949 = vmatmul.mubr.f32.vlgmr.msra.gmra.mrb[4].mxu0 %v3476_v42 }
 0x136   : > { %2979 = vmatmul.mubr.f32.vlgmr.msra.gmra.mrb[4].mxu1 %v3476_v42  ;;  %2983 = vmatprep.mubr.msk.f32.mxu0 %vm3241_vm0, %v3240_v36  ;;  %v2193_v42 = vand.u32 4294901760, %v2192_v34 }
 0x137   : > { %3013 = vmatprep.mubr.msk.f32.mxu1 %vm3241_vm0, %v3240_v36 }
 0x208   : > { %v1191_v15 = vpop.f32.mrb[4].mxu0 }
 0x209   : > { %v3041_v17 = vadd.f32 %v1191_v15, %v739_v14  ;;  %v1645_v18 = vpop.f32.mrb[4].mxu1  ;;  %v2950_v19 = vpop.f32.mrb[5].mxu0 }
 0x20a   : > { %v3042_v21 = vadd.f32 %v1645_v18, %v739_v14  ;;  %v2980_v22 = vpop.f32.mrb[5].mxu1 }
 0x20b   : > { %v1195_v23 = vadd.f32 3.0, %v3041_v17 }
 0x20c   : > { %v1649_v24 = vadd.f32 3.0, %v3042_v21 }
 0x20d   : > { %v1196_v26 = vmax.f32 %v1195_v23, 0.0 }
 0x20e   : > { %v1650_v28 = vmax.f32 %v1649_v24, 0.0 }
 0x20f   : > { %v1197_v29 = vmin.f32 %v1196_v26, 6.0 }
 0x210   : > { %v1651_v30 = vmin.f32 %v1650_v28, 6.0 }
 0x211   : > { %v1198_v33 = vmul.f32 %v3041_v17, %v1197_v29 }
 0x212   : > { %v1652_v35 = vmul.f32 %v3042_v21, %v1651_v30 }
 0x213   : > { %v1199_v37 = vmul.f32 0.16666667, %v1198_v33 }
 0x214   : > { %v1653_v39 = vmul.f32 0.16666667, %v1652_v35 }
 0x215   : > { %v1664_v41 = vand.u32 4294901760, %v1199_v37 }
 0x216   : > { %v2124_v43 = vand.u32 4294901760, %v1653_v39 }
 0x217   : > { %v1741_v44 = vsub.f32 %v1199_v37, %v1664_v41  ;;  %2982 = vmatpush3.msra.mxu0 %v1664_v41 }
 0x218   : > { %v2201_v45 = vsub.f32 %v1653_v39, %v2124_v43  ;;  %3012 = vmatpush3.msra.mxu1 %v2124_v43  ;;  %2984 = vmatmul.mubr.f32.vlgmr.msra.gmra.mrb[6].mxu0 %v1733_v40 }
 0x219   : > { %v1742_v46 = vand.u32 4294901760, %v1741_v44  ;;  %3014 = vmatmul.mubr.f32.vlgmr.msra.gmra.mrb[6].mxu1 %v2193_v42  ;;  %2986 = vmatprep.subr.mxu0 %v3240_v36 }
 0x21a   : > { %v2202_v47 = vand.u32 4294901760, %v2201_v45  ;;  %3016 = vmatprep.subr.mxu1 %v3240_v36  ;;  %2988 = vmatprep.mubr.msk.f32.mxu0 %vm3241_vm0, %v3240_v36 }
 0x21b   : > { %v1743_v48 = vsub.f32 %v1741_v44, %v1742_v46  ;;  %3018 = vmatprep.mubr.msk.f32.mxu1 %vm3241_vm0, %v3240_v36 }
 0x21c   : > { %v2203_v49 = vsub.f32 %v2201_v45, %v2202_v47 }
 0x21d   : > { %v1744_v50 = vand.u32 4294901760, %v1743_v48 }
 0x21e   : > { %v2204_v51 = vand.u32 4294901760, %v2203_v49 }
 0x21f   : > { %2987 = vmatpush3.msra.mxu0 %v1744_v50 }
 0x220   : > { %3017 = vmatpush3.msra.mxu1 %v2204_v51  ;;  %2989 = vmatmul.mubr.f32.vlgmr.msra.gmra.mrb[6].mxu0 %v3530_v12 }
 0x221   : > { %2991 = vmatprep.subr.mxu0 %v3240_v36  ;;  %3019 = vmatmul.mubr.f32.vlgmr.msra.gmra.mrb[6].mxu1 %v3532_v13 }
 0x222   : > { %3021 = vmatprep.subr.mxu1 %v3240_v36  ;;  %2992 = vmatpush3.msra.mxu0 %v1741_v44 }
 0x223   : > { %3022 = vmatpush3.msra.mxu1 %v2201_v45  ;;  %2993 = vmatprep.mubr.msk.f32.mxu0 %vm3241_vm0, %v3240_v36 }
 0x224   : > { %2996 = vmatprep.subr.mxu0 %v3240_v36  ;;  %3023 = vmatprep.mubr.msk.f32.mxu1 %vm3241_vm0, %v3240_v36 }
 0x225   : > { %3026 = vmatprep.subr.mxu1 %v3240_v36 }
 0x228   : > { %2994 = vmatmul.mubr.f32.vlgmr.msra.gmra.mrb[6].mxu0 %v1730_v16 }
 0x229   : > { %2997 = vmatpush3.msra.mxu0 %v1664_v41  ;;  %3024 = vmatmul.mubr.f32.vlgmr.msra.gmra.mrb[6].mxu1 %v2190_v20 }
 0x22a   : > { %3027 = vmatpush3.msra.mxu1 %v2124_v43  ;;  %2998 = vmatprep.mubr.msk.f32.mxu0 %vm3241_vm0, %v3240_v36 }
 0x22b   : > { %3001 = vmatprep.subr.mxu0 %v3240_v36  ;;  %3028 = vmatprep.mubr.msk.f32.mxu1 %vm3241_vm0, %v3240_v36 }
 0x22c   : > { %3031 = vmatprep.subr.mxu1 %v3240_v36 }
 0x230   : > { %2999 = vmatmul.mubr.f32.vlgmr.msra.gmra.mrb[6].mxu0 %v1731_v25 }
 0x231   : > { %3002 = vmatpush3.msra.mxu0 %v1742_v46  ;;  %3029 = vmatmul.mubr.f32.vlgmr.msra.gmra.mrb[6].mxu1 %v2191_v27 }
 0x232   : > { %3032 = vmatpush3.msra.mxu1 %v2202_v47  ;;  %3003 = vmatprep.mubr.msk.f32.mxu0 %vm3241_vm0, %v3240_v36 }
 0x233   : > { %3006 = vmatprep.subr.mxu0 %v3240_v36  ;;  %3033 = vmatprep.mubr.msk.f32.mxu1 %vm3241_vm0, %v3240_v36 }
 0x234   : > { %3036 = vmatprep.subr.mxu1 %v3240_v36 }
 0x238   : > { %3004 = vmatmul.mubr.f32.vlgmr.msra.gmra.mrb[6].mxu0 %v3530_v12 }
 0x239   : > { %3007 = vmatpush3.msra.mxu0 %v1664_v41  ;;  %3034 = vmatmul.mubr.f32.vlgmr.msra.gmra.mrb[6].mxu1 %v3532_v13 }
 0x23a   : > { %3037 = vmatpush3.msra.mxu1 %v2124_v43  ;;  %3008 = vmatprep.mubr.msk.f32.mxu0 %vm3241_vm0, %v3240_v36 }
 0x23b   : > { %3038 = vmatprep.mubr.msk.f32.mxu1 %vm3241_vm0, %v3240_v36  ;;  %v3162_v36 = vld [vmem:[%s3637_s3] ss:$8 sps:$4 sm:$0xff]   ;;  %2592 = vmatprep.subr.bf16.mxu0 %v3164_v52 }
 0x23c   : > { %2654 = vmatprep.subr.bf16.mxu1 %v3167_v53 }
 0x240   : > { %3009 = vmatmul.mubr.f32.vlgmr.msra.gmra.mrb[6].mxu0 %v3530_v12 }
 0x241   : > { %3039 = vmatmul.mubr.f32.vlgmr.msra.gmra.mrb[6].mxu1 %v3532_v13  ;;  %2624 = vmatprep.mubr.bf16.mxu0 %v3242_v38 }
 0x242   : > { %2686 = vmatprep.mubr.bf16.mxu1 %v3242_v38  ;;  %2593 = vmatpush1.bf16.msra.mxu0 %v3162_v36  ;;  %v2118_v38 = vpop.permute.xlu1 %2117 }
 0x243   : > { %2655 = vmatpush1.bf16.msra.mxu1 %v3165_v54 }
 0x313   : > { %v2105_v56 = vpop.f32.mrb[6].mxu0 }
 0x314   : > { %v3043_v57 = vadd.f32 %v2105_v56, %v1657_v55  ;;  %v2565_v58 = vpop.f32.mrb[6].mxu1  ;;  %v3010_v59 = vpop.f32.mrb[7].mxu0 }
 0x315   : > { %v3044_v60 = vadd.f32 %v2565_v58, %v2118_v38  ;;  %v3040_v61 = vpop.f32.mrb[7].mxu1 }
 0x316   : > { %v2814_v62 = vmul.f32 -1.442695, %v3043_v57 }
 0x317   : > { %v2815_v63 = vmul.f32 -1.442695, %v3044_v60 }
 0x318   : > { %3168 = vpow2.f32 %v2814_v62 }
 0x319   : > { %3170 = vpow2.f32 %v2815_v63 }
 0x322   : > { %v3169_v0 = vpop.eup %3168 }
 0x323   : > { %v3171_v1 = vpop.eup %3170  ;;  %v2112_v2 = vadd.f32 1.0, %v3169_v0 }
 0x324   : > { %v2572_v3 = vadd.f32 1.0, %v3171_v1 }
 0x325   : > { %3172 = vrcp.f32 %v2112_v2 }
 0x326   : > { %3174 = vrcp.f32 %v2572_v3 }
 0x32f   : > { %v3173_v4 = vpop.eup %3172 }
 0x330   : > { %v3175_v5 = vpop.eup %3174  ;;  %v2575_v6 = vpack.c.bf16 %v3173_v4, %v3173_v4 }
 0x331   : > { %v2638_v7 = vpack.c.bf16 %v3175_v5, %v3175_v5 }
 0x332   : > { %2818 = vmatmul.mubr.msk.bf16.vlgmr.msra.gmra.mrb[8].mxu0 %vm2588_vm4, %v2575_v6 }
 0x333   : > { %2821 = vmatmul.mubr.msk.bf16.vlgmr.msra.gmra.mrb[8].mxu1 %vm2588_vm4, %v2638_v7 }
 0x405   : > { %v2626_v8 = vpop.f32.mrb[8].mxu0 }
 0x406   : > { %v2688_v9 = vpop.f32.mrb[8].mxu1  ;;  %v2628_v10 = vpop.f32.mrb[9].mxu0 }
 0x407   : > { %v2635_v11 = vcombine.low %v2626_v8, %v2628_v10  ;;  %v2690_v12 = vpop.f32.mrb[9].mxu1  ;;  %v2630_v13 = vpop.f32.mrb[10].mxu0 }
 0x408   : > { %v2697_v14 = vcombine.low %v2688_v9, %v2690_v12  ;;  %v2692_v15 = vpop.f32.mrb[10].mxu1  ;;  %v2631_v16 = vpop.f32.mrb[11].mxu0 }
 0x409   : > { %v2637_v17 = vmul.f32 %v2635_v11, %v3453_v32  ;;  %v2693_v18 = vpop.f32.mrb[11].mxu1 }
 0x40b   : > { %v2699_v19 = vmul.f32 %v2697_v14, %v2637_v17 }
 0x40d   : > { %2700 = vst [vmem:[%s379_s22] sm:$0xff] %v2699_v19 }
 0x40e   : > { %3189 = shalt.err (!%p3186_p3)
}
 0x40f   : > { %s3190_s16 = scalar_lea.hbm %s3592_s25, 128  ;;  %s3194_s22 = scalar_lea.hbm %s3645_s11, 256 }
 0x410   : > { %p3191_p4 = scmp.ne.s32.totalorder %s3592_s25, %s3190_s16  ;;  %p3195_p9 = scmp.lt.u32.totalorder %s3592_s25, %s3645_s11 }
 0x411   : > { %p3196_p10 = scmp.lt.u32.totalorder %s3194_s22, %s3190_s16  ;;  %p3198_p12 = scmp.lt.u32.totalorder %s3190_s16, %s3592_s25 }
 0x412   : > { %p3192_p7 = pnand %p3191_p4, %p3342_p5 }
 0x413   : > { %p3197_p11 = por %p3196_p10, %p3195_p9 }
 0x414   : > { %p3193_p8 = pneg %p3192_p7 }
 0x415   : > { %p3199_p13 = por %p3198_p12, %p3197_p11 }
 0x417   : > { %p3200_p0 = pnand %p3199_p13, %p3193_p8 }
 0x419   : > { %3203 = shalt.err (!%p3200_p0)
}
 0x41a   : > { %3085 = dma.vmem_to_hbm [thread:$0]  (%p3342_p5), %s3594_s19, 128, %s3592_s25, %s2702_s29  }
 0x41b PF: > { %p3091_p1 = scmp.ge.s32.totalorder %s3238_s20, 2  ;;  %s2728_s30 = sand.u32 1, %s3226_s17  }
 0x41c   : > { %s2729_s21 = scalar_lea.sflag [#allocation3], %s2728_s30 }
 0x41d   : > { %p3088_p2 = pnand %p3091_p1, %p3346_p6 }
 0x41f   : > { %3221 = dma.done.wait (!%p3088_p2), %s2729_s21, 128  }
 0x420   : > { %3223 = vsyncadd (!%p3088_p2), %s2729_s21, 4294967168  ;;  %s3651_s12 = sld [smem:[#allocation5_spill]]  ;;  %s3652_s19 = sld [smem:[#allocation6_spill]] }
 0x421   : > { %p21_p3 = scmp.ge.s32.totalorder %s3329_s23, 4   ;;  %s3653_s17 = smov %s3230_s18 }
 0x422   : > { %s3655_s20 = smov %s3329_s23 }
 0x423   :  { %23 = sbr.rel (!%p21_p3) target bundleno = 3 (0x3), region = 99 }
 0x426   : > { %s3654_s18 = smov %s3651_s12 }
 0x42a   :  { %2734 = vsyncpa [#allocation3], 1 }
 0x42b   :  { %2736 = vsyncpa [#allocation3 + $0x1], 1 }

// kernel: tpu_custom_call.1
= control target key start
LH: loop header
LB: loop body
LE: loop exit
PB: predicated region body
PF: predicated region fallthrough
CT: control target
= control target key end

     0   :  { %16 = vsyncpa [#allocation3], 0  ;;  %s3634_s0 = inlined_call_operand.vmem [shape: f32[2,4,256], index: 0, kind: input, shape index: {}]   ;;  %s3635_s1 = inlined_call_operand.vmem [shape: bf16[256,16], index: 1, kind: input, shape index: {}]   ;;  %s3636_s2 = inlined_call_operand.vmem [shape: bf16[256,16], index: 2, kind: input, shape index: {}]   ;;  %s3637_s3 = inlined_call_operand.vmem [shape: bf16[16,256], index: 3, kind: input, shape index: {}]   ;;  %s3638_s4 = inlined_call_operand.vmem [shape: bf16[16,256], index: 4, kind: input, shape index: {}]   ;;  %s3639_s5 = inlined_call_operand.vmem [shape: f32[8,4], index: 5, kind: input, shape index: {}]   ;;  %s3640_s6 = inlined_call_operand.vmem [shape: f32[8,1], index: 6, kind: input, shape index: {}]   ;;  %s3641_s7 = inlined_call_operand.vmem [shape: f32[4,8], index: 7, kind: input, shape index: {}]   ;;  %s3642_s8 = inlined_call_operand.vmem [shape: f32[4,1], index: 8, kind: input, shape index: {}]   ;;  %s3643_s9 = inlined_call_operand.vmem [shape: f32[4,8], index: 9, kind: input, shape index: {}]   ;;  %s3644_s10 = inlined_call_operand.vmem [shape: f32[4,1], index: 10, kind: input, shape index: {}]   ;;  %s3645_s11 = inlined_call_operand.hbm [shape: f32[2,4,256], index: 11, kind: output, shape index: {}]  }
   0x1   :  { %18 = vsyncpa [#allocation3 + $0x1], 0  ;;  %s3304_s17 = smov 0   ;;  %s3306_s18 = smov 0  }
   0x2   :  { %s3308_s19 = smov 0   ;;  %s3310_s20 = smov 0  }
   0x3 LB: > { %3647 = sst [smem:[#allocation5_spill]] %s3234_s19  ;;  %s3325_s21 = sadd.s32 4294967295, %s3238_s20   ;;  %s3238_s20 = sphi %s3310_s20, %s3655_s20   ;;  %s3234_s19 = sphi %s3308_s19, %s3652_s19   ;;  %s3230_s18 = sphi %s3306_s18, %s3654_s18   ;;  %s3226_s17 = sphi %s3304_s17, %s3653_s17  }
   0x4   : > { %s2775_s22 = sadd.s32 4294967294, %s3238_s20   ;;  %s3329_s23 = sadd.s32 1, %s3238_s20  }
   0x5   : > { %s267_s24 = sadd.s32 1, %s3234_s19  ;;  %s264_s25 = ssub.s32 %s3238_s20, %s3329_s23 }
   0x6   : > { %p277_p0 = scmp.ne.s32.totalorder %s3234_s19, %s3230_s18  ;;  %p265_p1 = scmp.eq.s32.totalorder %s264_s25, 0 }
   0x7   : > { %p278_p2 = scmp.eq.s32.totalorder %s3325_s21, 1  ;;  %p283_p3 = scmp.ne.s32.totalorder %s3230_s18, %s3226_s17 }
   0x8   : > { %p284_p4 = scmp.eq.s32.totalorder %s2775_s22, 1  ;;  %p2778_p7 = scmp.ge.s32.totalorder %s3238_s20, 1 }
   0x9   : > { %s3340_s26 = scalar_select %p265_p1, %s3234_s19, %s267_s24  }
   0xa   : > { %p3342_p5 = por %p278_p2, %p277_p0  ;;  %p3346_p6 = por %p284_p4, %p283_p3 }
   0xb   : > { %3648 = sst [smem:[#allocation6_spill]] %s3340_s26  ;;  %p340_p8 = scmp.lt.s32.totalorder %s3238_s20, 3 }
   0xd   : > { %p341_p9 = pnand %p2778_p7, %p340_p8 }
   0xe   : > { %v3129_v0 = vld [vmem:[%s3635_s1 + $0x40] sm:$0xff] (!%p341_p9)   ;;  %v3133_v4 = vld [vmem:[%s3635_s1 + $0x48] sm:$0xff] (!%p341_p9)   ;;  %v3137_v8 = vld [vmem:[%s3635_s1 + $0x50] sm:$0xff] (!%p341_p9)   ;;  %p380_p10 = scmp.lt.s32.totalorder (!%p341_p9), %s3325_s21, 1  ;;  %v3240_v36 = vmov (!%p341_p9), 0.0   ;;  %vm3241_vm0 = vmmov (!%p341_p9), 0  }
   0xf   : > { %344 = sbr.rel (%p341_p9) target bundleno = 1051 (0x41b), region = 64  ;;  %v3130_v1 = vld [vmem:[%s3636_s2 + $0x40] sm:$0xff] (!%p341_p9)   ;;  %2829 = vmatprep.subr.bf16.mxu0 (!%p341_p9), %v3129_v0  ;;  %v3134_v5 = vld [vmem:[%s3636_s2 + $0x48] sm:$0xff] (!%p341_p9)   ;;  %v3138_v9 = vld [vmem:[%s3636_s2 + $0x50] sm:$0xff] (!%p341_p9)   ;;  %v3242_v38 = vmov (!%p341_p9), 0   ;;  %vm741_vm1 = vcmask (!%p341_p9), 31744  }
  0x10   : > { %v3131_v2 = vld [vmem:[%s3635_s1] sm:$0xff] (!%p341_p9)   ;;  %2851 = vmatprep.subr.bf16.mxu1 (!%p341_p9), %v3130_v1  ;;  %v3135_v6 = vld [vmem:[%s3635_s1 + $0x8] sm:$0xff] (!%p341_p9)   ;;  %v3139_v10 = vld [vmem:[%s3635_s1 + $0x10] sm:$0xff] (!%p341_p9)   ;;  %3127 = vset.pattern.permute.xlu0 (!%p341_p9), %v3242_v38  ;;  %vm745_vm2 = vcmask (!%p341_p9), 1043456   ;;  %vm1659_vm3 = vcmask (!%p341_p9), 64512   ;;  %vm2588_vm4 = vcmask (!%p341_p9), 130048  }
  0x11   : > { %v3132_v3 = vld [vmem:[%s3636_s2] sm:$0xff] (!%p341_p9)   ;;  %2830 = vmatpush3.bf16.msra.mxu0 (!%p341_p9), %v3131_v2  ;;  %v3136_v7 = vld [vmem:[%s3636_s2 + $0x8] sm:$0xff] (!%p341_p9)   ;;  %v3140_v11 = vld [vmem:[%s3636_s2 + $0x10] sm:$0xff] (!%p341_p9)   ;;  %3128 = vset.pattern.permute.xlu1 (!%p341_p9), %v3242_v38  ;;  %s2828_s26 = sshll.u32 (!%p341_p9), %s3325_s21, 7 }
  0x12   : > { %2852 = vmatpush3.bf16.msra.mxu1 (!%p341_p9), %v3132_v3  ;;  %2831 = vmatprep.subr.bf16.mxu0 (!%p341_p9), %v3133_v4  ;;  %v3141_v12 = vld [vmem:[%s3635_s1 + $0x58] sm:$0xff] (!%p341_p9)   ;;  %v3145_v16 = vld [vmem:[%s3635_s1 + $0x60] sm:$0xff] (!%p341_p9)   ;;  %v3149_v20 = vld [vmem:[%s3635_s1 + $0x68] sm:$0xff] (!%p341_p9)   ;;  %s3592_s25 = scalar_lea.hbm (!%p341_p9), %s3645_s11, %s2828_s26 }
  0x13   : > { %2853 = vmatprep.subr.bf16.mxu1 (!%p341_p9), %v3134_v5  ;;  %v3142_v13 = vld [vmem:[%s3636_s2 + $0x58] sm:$0xff] (!%p341_p9)   ;;  %v3146_v17 = vld [vmem:[%s3636_s2 + $0x60] sm:$0xff] (!%p341_p9)   ;;  %v3150_v21 = vld [vmem:[%s3636_s2 + $0x68] sm:$0xff] (!%p341_p9)  }
  0x14   : > { %v3143_v14 = vld [vmem:[%s3635_s1 + $0x18] sm:$0xff] (!%p341_p9)   ;;  %v3147_v18 = vld [vmem:[%s3635_s1 + $0x20] sm:$0xff] (!%p341_p9)   ;;  %v3151_v22 = vld [vmem:[%s3635_s1 + $0x28] sm:$0xff] (!%p341_p9)  }
  0x15   : > { %2832 = vmatpush3.bf16.msra.mxu0 (!%p341_p9), %v3135_v6  ;;  %v3144_v15 = vld [vmem:[%s3636_s2 + $0x18] sm:$0xff] (!%p341_p9)   ;;  %v3148_v19 = vld [vmem:[%s3636_s2 + $0x20] sm:$0xff] (!%p341_p9)   ;;  %v3152_v23 = vld [vmem:[%s3636_s2 + $0x28] sm:$0xff] (!%p341_p9)  }
  0x16   : > { %2854 = vmatpush3.bf16.msra.mxu1 %v3136_v7  ;;  %2833 = vmatprep.subr.bf16.mxu0 %v3137_v8  ;;  %s381_s16 = scalar_select %p380_p10, %s3325_s21, 1  ;;  %v3153_v24 = vld [vmem:[%s3635_s1 + $0x70] sm:$0xff]   ;;  %v3157_v28 = vld [vmem:[%s3635_s1 + $0x78] sm:$0xff]   ;;  %v731_v37 = vld [vmem:[%s3640_s6] sm:$0xff] }
  0x17   : > { %2855 = vmatprep.subr.bf16.mxu1 %v3138_v9  ;;  %v3154_v25 = vld [vmem:[%s3636_s2 + $0x70] sm:$0xff]   ;;  %v3158_v29 = vld [vmem:[%s3636_s2 + $0x78] sm:$0xff]   ;;  %738 = vperm.xlu0 %3127, %v731_v37   ;;  %v733_v39 = vld [vmem:[%s3642_s8] sm:$0xf]  ;;  %s3243_s21 = smov [#allocation2]  }
  0x18   : > { %v3155_v26 = vld [vmem:[%s3635_s1 + $0x30] sm:$0xff]   ;;  %s2827_s15 = sshll.u32 %s381_s16, 3  ;;  %v3159_v30 = vld [vmem:[%s3635_s1 + $0x38] sm:$0xff]   ;;  %v730_v40 = vld [vmem:[%s3639_s5] sm:$0xff]  ;;  %s377_s16 = sand.u32 1, %s3230_s18  }
  0x19   : > { %2834 = vmatpush3.bf16.msra.mxu0 %v3139_v10  ;;  %v3156_v27 = vld [vmem:[%s3636_s2 + $0x30] sm:$0xff]   ;;  %s384_s13 = scalar_lea.vmem %s3634_s0, %s2827_s15  ;;  %v3160_v31 = vld [vmem:[%s3636_s2 + $0x38] sm:$0xff]   ;;  %v743_v41 = vsel %vm741_vm1, %v730_v40, 0  ;;  %v735_v7 = vld [vmem:[%s3644_s10] sm:$0xf]  ;;  %s2779_s14 = sshll.u32 %s377_s16, 3 }
  0x1a   : > { %2856 = vmatpush3.bf16.msra.mxu1 %v3140_v11  ;;  %2835 = vmatprep.subr.bf16.mxu0 %v3141_v12  ;;  %v3453_v32 = vld [vmem:[%s384_s13] sm:$0xff]  ;;  %v3476_v42 = vand.u32 4294901760, %v743_v41  ;;  %s379_s22 = scalar_lea.vmem [#allocation2], %s2779_s14  ;;  %s2702_s29 = scalar_lea.sflag [#allocation3], %s377_s16 }
  0x1b   : > { %2857 = vmatprep.subr.bf16.mxu1 %v3142_v13  ;;  %v388_v33 = vcombine.high %v3453_v32, %v3453_v32  ;;  %v390_v34 = vpack.c.bf16 %v3453_v32, %v3453_v32  ;;  %1656 = vperm.xlu0 %3127, %v733_v39   ;;  %v732_v8 = vld [vmem:[%s3641_s7] sm:$0xf]  ;;  %s2716_s19 = sshll.u32 %s379_s22, 4  ;;  %s3180_s12 = sshll.u32 %s3243_s21, 4  ;;  %s3594_s19 = int_to_ptr.vmem [resolvable:$true] %s2716_s19  ;;  %s3181_s12 = int_to_ptr.vmem [resolvable:$false] %s3180_s12 }
  0x1c   : > { %v816_v43 = vsub.f32 %v743_v41, %v3476_v42  ;;  %2117 = vperm.xlu1 %3128, %v735_v7   ;;  %v734_v9 = vld [vmem:[%s3643_s9] sm:$0xf]  ;;  %v1661_v10 = vsel %vm1659_vm3, %v732_v8, 0  ;;  %s3176_s30 = scalar_lea.vmem %s3594_s19, 128  ;;  %s3182_s13 = scalar_lea.vmem %s3181_s12, 256 }
  0x1d   : > { %2836 = vmatpush3.bf16.msra.mxu0 %v3143_v14  ;;  %v391_v35 = vpack.c.bf16 %v388_v33, %v388_v33  ;;  %v2121_v11 = vsel %vm1659_vm3, %v734_v9, 0  ;;  %v3530_v12 = vand.u32 4294901760, %v1661_v10  ;;  %p3177_p11 = scmp.ne.s32.totalorder %s3594_s19, %s3176_s30  ;;  %p3183_p0 = scmp.lt.s32.totalorder %s3594_s19, %s3181_s12 }
  0x1e   : > { %2858 = vmatpush3.bf16.msra.mxu1 %v3144_v15  ;;  %2837 = vmatprep.subr.bf16.mxu0 %v3145_v16  ;;  %v817_v44 = vand.u32 4294901760, %v816_v43  ;;  %v3532_v13 = vand.u32 4294901760, %v2121_v11  ;;  %p3184_p1 = scmp.lt.s32.totalorder %s3182_s13, %s3176_s30 }
  0x1f   : > { %2859 = vmatprep.subr.bf16.mxu1 %v3146_v17  ;;  %552 = vmatprep.mubr.bf16.mxu0 %v391_v35  ;;  %v1730_v16 = vsub.f32 %v1661_v10, %v3530_v12  ;;  %p3178_p12 = pnand %p3177_p11, %p3342_p5 }
  0x20   : > { %721 = vmatprep.mubr.bf16.mxu1 %v391_v35  ;;  %v818_v53 = vsub.f32 %v816_v43, %v817_v44  ;;  %p3185_p2 = por %p3184_p1, %p3183_p0 }
  0x21   : > { %2838 = vmatpush3.bf16.msra.mxu0 %v3147_v18  ;;  %p3179_p13 = pneg %p3178_p12 }
  0x22   : > { %2860 = vmatpush3.bf16.msra.mxu1 %v3148_v19  ;;  %2839 = vmatprep.subr.bf16.mxu0 %v3149_v20  ;;  %v819_v60 = vand.u32 4294901760, %v818_v53  ;;  %v2190_v20 = vsub.f32 %v2121_v11, %v3532_v13  ;;  %v3167_v53 = vld [vmem:[%s3638_s4 + $0x4] ss:$8 sps:$4 sm:$0xff]  }
  0x23   : > { %2861 = vmatprep.subr.bf16.mxu1 %v3150_v21  ;;  %p3186_p3 = pnand %p3185_p2, %p3179_p13 }
  0x25   : > { %2840 = vmatpush3.bf16.msra.mxu0 %v3151_v22 }
  0x26   : > { %2862 = vmatpush3.bf16.msra.mxu1 %v3152_v23  ;;  %2841 = vmatprep.subr.bf16.mxu0 %v3153_v24 }
  0x27   : > { %2863 = vmatprep.subr.bf16.mxu1 %v3154_v25  ;;  %v1731_v25 = vand.u32 4294901760, %v1730_v16 }
  0x29   : > { %2842 = vmatpush3.bf16.msra.mxu0 %v3155_v26 }
  0x2a   : > { %2864 = vmatpush3.bf16.msra.mxu1 %v3156_v27  ;;  %2843 = vmatprep.subr.bf16.mxu0 %v3157_v28  ;;  %v2191_v27 = vand.u32 4294901760, %v2190_v20 }
  0x2b   : > { %2865 = vmatprep.subr.bf16.mxu1 %v3158_v29 }
  0x2d   : > { %2844 = vmatpush3.bf16.msra.mxu0 %v3159_v30 }
  0x2e   : > { %2866 = vmatpush3.bf16.msra.mxu1 %v3160_v31  ;;  %2921 = vmatprep.subr.mxu0 %v3240_v36  ;;  %v1732_v31 = vsub.f32 %v1730_v16, %v1731_v25 }
  0x2f   : > { %2951 = vmatprep.subr.mxu1 %v3240_v36 }
  0x30   : > { %553 = vmatmul.mubr.bf16.vlgmr.msra.gmra.mrb[0].mxu0 %v390_v34  ;;  %v1733_v40 = vand.u32 4294901760, %v1732_v31 }
  0x31   : > { %722 = vmatmul.mubr.bf16.vlgmr.msra.gmra.mrb[0].mxu1 %v390_v34  ;;  %2923 = vmatprep.mubr.msk.f32.mxu0 %vm3241_vm0, %v3240_v36  ;;  %v2192_v34 = vsub.f32 %v2190_v20, %v2191_v27 }
  0x32   : > { %2953 = vmatprep.mubr.msk.f32.mxu1 %vm3241_vm0, %v3240_v36 }
  0x96   : > { %v739_v14 = vpop.permute.xlu0 %738 }
 0x103   : > { %v2845_v45 = vpop.f32.mrb[0].mxu0 }
 0x104   : > { %v2867_v46 = vpop.f32.mrb[0].mxu1  ;;  %v2846_v47 = vpop.f32.mrb[1].mxu0 }
 0x105   : > { %v2868_v48 = vpop.f32.mrb[1].mxu1  ;;  %v2847_v49 = vadd.f32 %v2846_v47, %v2845_v45  ;;  %v2848_v51 = vpop.f32.mrb[2].mxu0 }
 0x106   : > { %v2869_v50 = vadd.f32 %v2868_v48, %v2867_v46  ;;  %v2870_v52 = vpop.f32.mrb[2].mxu1  ;;  %v2849_v54 = vpop.f32.mrb[3].mxu0 }
 0x107   : > { %v2871_v55 = vpop.f32.mrb[3].mxu1  ;;  %v560_v56 = vmul.f32 0.0625, %v2847_v49  ;;  %v3164_v52 = vld [vmem:[%s3637_s3 + $0x4] ss:$8 sps:$4 sm:$0xff]   ;;  %v3165_v54 = vld [vmem:[%s3638_s4] ss:$8 sps:$4 sm:$0xff]  }
 0x108   : > { %v729_v57 = vmul.f32 0.0625, %v2869_v50  ;;  %v1657_v55 = vpop.permute.xlu0 %1656 }
 0x109   : > { %v747_v58 = vsel %vm745_vm2, %v560_v56, 0 }
 0x10a   : > { %v1201_v59 = vsel %vm745_vm2, %v729_v57, 0  ;;  %v750_v61 = vand.u32 4294901760, %v747_v58 }
 0x10b   : > { %v1204_v62 = vand.u32 4294901760, %v1201_v59 }
 0x10c   : > { %v827_v63 = vsub.f32 %v747_v58, %v750_v61  ;;  %2922 = vmatpush3.msra.mxu0 %v750_v61 }
 0x10d   : > { %v1281_v0 = vsub.f32 %v1201_v59, %v1204_v62  ;;  %2952 = vmatpush3.msra.mxu1 %v1204_v62  ;;  %2924 = vmatmul.mubr.f32.vlgmr.msra.gmra.mrb[4].mxu0 %v819_v60 }
 0x10e   : > { %2954 = vmatmul.mubr.f32.vlgmr.msra.gmra.mrb[4].mxu1 %v819_v60  ;;  %v828_v1 = vand.u32 4294901760, %v827_v63  ;;  %2926 = vmatprep.subr.mxu0 %v3240_v36 }
 0x10f   : > { %v1282_v2 = vand.u32 4294901760, %v1281_v0  ;;  %2956 = vmatprep.subr.mxu1 %v3240_v36  ;;  %2928 = vmatprep.mubr.msk.f32.mxu0 %vm3241_vm0, %v3240_v36 }
 0x110   : > { %2958 = vmatprep.mubr.msk.f32.mxu1 %vm3241_vm0, %v3240_v36  ;;  %v829_v3 = vsub.f32 %v827_v63, %v828_v1 }
 0x111   : > { %v1283_v4 = vsub.f32 %v1281_v0, %v1282_v2 }
 0x112   : > { %v830_v5 = vand.u32 4294901760, %v829_v3 }
 0x113   : > { %v1284_v6 = vand.u32 4294901760, %v1283_v4 }
 0x114   : > { %2927 = vmatpush3.msra.mxu0 %v830_v5 }
 0x115   : > { %2957 = vmatpush3.msra.mxu1 %v1284_v6  ;;  %2929 = vmatmul.mubr.f32.vlgmr.msra.gmra.mrb[4].mxu0 %v3476_v42 }
 0x116   : > { %2931 = vmatprep.subr.mxu0 %v3240_v36  ;;  %2959 = vmatmul.mubr.f32.vlgmr.msra.gmra.mrb[4].mxu1 %v3476_v42 }
 0x117   : > { %2961 = vmatprep.subr.mxu1 %v3240_v36  ;;  %2932 = vmatpush3.msra.mxu0 %v827_v63 }
 0x118   : > { %2962 = vmatpush3.msra.mxu1 %v1281_v0  ;;  %2933 = vmatprep.mubr.msk.f32.mxu0 %vm3241_vm0, %v3240_v36 }
 0x119   : > { %2936 = vmatprep.subr.mxu0 %v3240_v36  ;;  %2963 = vmatprep.mubr.msk.f32.mxu1 %vm3241_vm0, %v3240_v36 }
 0x11a   : > { %2966 = vmatprep.subr.mxu1 %v3240_v36 }
 0x11d   : > { %2934 = vmatmul.mubr.f32.vlgmr.msra.gmra.mrb[4].mxu0 %v816_v43 }
 0x11e   : > { %2937 = vmatpush3.msra.mxu0 %v750_v61  ;;  %2964 = vmatmul.mubr.f32.vlgmr.msra.gmra.mrb[4].mxu1 %v816_v43 }
 0x11f   : > { %2967 = vmatpush3.msra.mxu1 %v1204_v62  ;;  %2938 = vmatprep.mubr.msk.f32.mxu0 %vm3241_vm0, %v3240_v36 }
 0x120   : > { %2941 = vmatprep.subr.mxu0 %v3240_v36  ;;  %2968 = vmatprep.mubr.msk.f32.mxu1 %vm3241_vm0, %v3240_v36 }
 0x121   : > { %2971 = vmatprep.subr.mxu1 %v3240_v36 }
 0x125   : > { %2939 = vmatmul.mubr.f32.vlgmr.msra.gmra.mrb[4].mxu0 %v817_v44 }
 0x126   : > { %2942 = vmatpush3.msra.mxu0 %v828_v1  ;;  %2969 = vmatmul.mubr.f32.vlgmr.msra.gmra.mrb[4].mxu1 %v817_v44 }
 0x127   : > { %2972 = vmatpush3.msra.mxu1 %v1282_v2  ;;  %2943 = vmatprep.mubr.msk.f32.mxu0 %vm3241_vm0, %v3240_v36 }
 0x128   : > { %2946 = vmatprep.subr.mxu0 %v3240_v36  ;;  %2973 = vmatprep.mubr.msk.f32.mxu1 %vm3241_vm0, %v3240_v36 }
 0x129   : > { %2976 = vmatprep.subr.mxu1 %v3240_v36 }
 0x12d   : > { %2944 = vmatmul.mubr.f32.vlgmr.msra.gmra.mrb[4].mxu0 %v3476_v42 }
 0x12e   : > { %2947 = vmatpush3.msra.mxu0 %v750_v61  ;;  %2974 = vmatmul.mubr.f32.vlgmr.msra.gmra.mrb[4].mxu1 %v3476_v42 }
 0x12f   : > { %2977 = vmatpush3.msra.mxu1 %v1204_v62  ;;  %2948 = vmatprep.mubr.msk.f32.mxu0 %vm3241_vm0, %v3240_v36 }
 0x130   : > { %2978 = vmatprep.mubr.msk.f32.mxu1 %vm3241_vm0, %v3240_v36  ;;  %2981 = vmatprep.subr.mxu0 %v3240_v36 }
 0x131   : > { %3011 = vmatprep.subr.mxu1 %v3240_v36 }
 0x135   : > { %2949 = vmatmul.mubr.f32.vlgmr.msra.gmra.mrb[4].mxu0 %v3476_v42 }
 0x136   : > { %2979 = vmatmul.mubr.f32.vlgmr.msra.gmra.mrb[4].mxu1 %v3476_v42  ;;  %2983 = vmatprep.mubr.msk.f32.mxu0 %vm3241_vm0, %v3240_v36  ;;  %v2193_v42 = vand.u32 4294901760, %v2192_v34 }
 0x137   : > { %3013 = vmatprep.mubr.msk.f32.mxu1 %vm3241_vm0, %v3240_v36 }
 0x208   : > { %v1191_v15 = vpop.f32.mrb[4].mxu0 }
 0x209   : > { %v3041_v17 = vadd.f32 %v1191_v15, %v739_v14  ;;  %v1645_v18 = vpop.f32.mrb[4].mxu1  ;;  %v2950_v19 = vpop.f32.mrb[5].mxu0 }
 0x20a   : > { %v3042_v21 = vadd.f32 %v1645_v18, %v739_v14  ;;  %v2980_v22 = vpop.f32.mrb[5].mxu1 }
 0x20b   : > { %v1195_v23 = vadd.f32 3.0, %v3041_v17 }
 0x20c   : > { %v1649_v24 = vadd.f32 3.0, %v3042_v21 }
 0x20d   : > { %v1196_v26 = vmax.f32 %v1195_v23, 0.0 }
 0x20e   : > { %v1650_v28 = vmax.f32 %v1649_v24, 0.0 }
 0x20f   : > { %v1197_v29 = vmin.f32 %v1196_v26, 6.0 }
 0x210   : > { %v1651_v30 = vmin.f32 %v1650_v28, 6.0 }
 0x211   : > { %v1198_v33 = vmul.f32 %v3041_v17, %v1197_v29 }
 0x212   : > { %v1652_v35 = vmul.f32 %v3042_v21, %v1651_v30 }
 0x213   : > { %v1199_v37 = vmul.f32 0.16666667, %v1198_v33 }
 0x214   : > { %v1653_v39 = vmul.f32 0.16666667, %v1652_v35 }
 0x215   : > { %v1664_v41 = vand.u32 4294901760, %v1199_v37 }
 0x216   : > { %v2124_v43 = vand.u32 4294901760, %v1653_v39 }
 0x217   : > { %v1741_v44 = vsub.f32 %v1199_v37, %v1664_v41  ;;  %2982 = vmatpush3.msra.mxu0 %v1664_v41 }
 0x218   : > { %v2201_v45 = vsub.f32 %v1653_v39, %v2124_v43  ;;  %3012 = vmatpush3.msra.mxu1 %v2124_v43  ;;  %2984 = vmatmul.mubr.f32.vlgmr.msra.gmra.mrb[6].mxu0 %v1733_v40 }
 0x219   : > { %v1742_v46 = vand.u32 4294901760, %v1741_v44  ;;  %3014 = vmatmul.mubr.f32.vlgmr.msra.gmra.mrb[6].mxu1 %v2193_v42  ;;  %2986 = vmatprep.subr.mxu0 %v3240_v36 }
 0x21a   : > { %v2202_v47 = vand.u32 4294901760, %v2201_v45  ;;  %3016 = vmatprep.subr.mxu1 %v3240_v36  ;;  %2988 = vmatprep.mubr.msk.f32.mxu0 %vm3241_vm0, %v3240_v36 }
 0x21b   : > { %v1743_v48 = vsub.f32 %v1741_v44, %v1742_v46  ;;  %3018 = vmatprep.mubr.msk.f32.mxu1 %vm3241_vm0, %v3240_v36 }
 0x21c   : > { %v2203_v49 = vsub.f32 %v2201_v45, %v2202_v47 }
 0x21d   : > { %v1744_v50 = vand.u32 4294901760, %v1743_v48 }
 0x21e   : > { %v2204_v51 = vand.u32 4294901760, %v2203_v49 }
 0x21f   : > { %2987 = vmatpush3.msra.mxu0 %v1744_v50 }
 0x220   : > { %3017 = vmatpush3.msra.mxu1 %v2204_v51  ;;  %2989 = vmatmul.mubr.f32.vlgmr.msra.gmra.mrb[6].mxu0 %v3530_v12 }
 0x221   : > { %2991 = vmatprep.subr.mxu0 %v3240_v36  ;;  %3019 = vmatmul.mubr.f32.vlgmr.msra.gmra.mrb[6].mxu1 %v3532_v13 }
 0x222   : > { %3021 = vmatprep.subr.mxu1 %v3240_v36  ;;  %2992 = vmatpush3.msra.mxu0 %v1741_v44 }
 0x223   : > { %3022 = vmatpush3.msra.mxu1 %v2201_v45  ;;  %2993 = vmatprep.mubr.msk.f32.mxu0 %vm3241_vm0, %v3240_v36 }
 0x224   : > { %2996 = vmatprep.subr.mxu0 %v3240_v36  ;;  %3023 = vmatprep.mubr.msk.f32.mxu1 %vm3241_vm0, %v3240_v36 }
 0x225   : > { %3026 = vmatprep.subr.mxu1 %v3240_v36 }
 0x228   : > { %2994 = vmatmul.mubr.f32.vlgmr.msra.gmra.mrb[6].mxu0 %v1730_v16 }
 0x229   : > { %2997 = vmatpush3.msra.mxu0 %v1664_v41  ;;  %3024 = vmatmul.mubr.f32.vlgmr.msra.gmra.mrb[6].mxu1 %v2190_v20 }
 0x22a   : > { %3027 = vmatpush3.msra.mxu1 %v2124_v43  ;;  %2998 = vmatprep.mubr.msk.f32.mxu0 %vm3241_vm0, %v3240_v36 }
 0x22b   : > { %3001 = vmatprep.subr.mxu0 %v3240_v36  ;;  %3028 = vmatprep.mubr.msk.f32.mxu1 %vm3241_vm0, %v3240_v36 }
 0x22c   : > { %3031 = vmatprep.subr.mxu1 %v3240_v36 }
 0x230   : > { %2999 = vmatmul.mubr.f32.vlgmr.msra.gmra.mrb[6].mxu0 %v1731_v25 }
 0x231   : > { %3002 = vmatpush3.msra.mxu0 %v1742_v46  ;;  %3029 = vmatmul.mubr.f32.vlgmr.msra.gmra.mrb[6].mxu1 %v2191_v27 }
 0x232   : > { %3032 = vmatpush3.msra.mxu1 %v2202_v47  ;;  %3003 = vmatprep.mubr.msk.f32.mxu0 %vm3241_vm0, %v3240_v36 }
 0x233   : > { %3006 = vmatprep.subr.mxu0 %v3240_v36  ;;  %3033 = vmatprep.mubr.msk.f32.mxu1 %vm3241_vm0, %v3240_v36 }
 0x234   : > { %3036 = vmatprep.subr.mxu1 %v3240_v36 }
 0x238   : > { %3004 = vmatmul.mubr.f32.vlgmr.msra.gmra.mrb[6].mxu0 %v3530_v12 }
 0x239   : > { %3007 = vmatpush3.msra.mxu0 %v1664_v41  ;;  %3034 = vmatmul.mubr.f32.vlgmr.msra.gmra.mrb[6].mxu1 %v3532_v13 }
 0x23a   : > { %3037 = vmatpush3.msra.mxu1 %v2124_v43  ;;  %3008 = vmatprep.mubr.msk.f32.mxu0 %vm3241_vm0, %v3240_v36 }
 0x23b   : > { %3038 = vmatprep.mubr.msk.f32.mxu1 %vm3241_vm0, %v3240_v36  ;;  %v3162_v36 = vld [vmem:[%s3637_s3] ss:$8 sps:$4 sm:$0xff]   ;;  %2592 = vmatprep.subr.bf16.mxu0 %v3164_v52 }
 0x23c   : > { %2654 = vmatprep.subr.bf16.mxu1 %v3167_v53 }
 0x240   : > { %3009 = vmatmul.mubr.f32.vlgmr.msra.gmra.mrb[6].mxu0 %v3530_v12 }
 0x241   : > { %3039 = vmatmul.mubr.f32.vlgmr.msra.gmra.mrb[6].mxu1 %v3532_v13  ;;  %2624 = vmatprep.mubr.bf16.mxu0 %v3242_v38 }
 0x242   : > { %2686 = vmatprep.mubr.bf16.mxu1 %v3242_v38  ;;  %2593 = vmatpush1.bf16.msra.mxu0 %v3162_v36  ;;  %v2118_v38 = vpop.permute.xlu1 %2117 }
 0x243   : > { %2655 = vmatpush1.bf16.msra.mxu1 %v3165_v54 }
 0x313   : > { %v2105_v56 = vpop.f32.mrb[6].mxu0 }
 0x314   : > { %v3043_v57 = vadd.f32 %v2105_v56, %v1657_v55  ;;  %v2565_v58 = vpop.f32.mrb[6].mxu1  ;;  %v3010_v59 = vpop.f32.mrb[7].mxu0 }
 0x315   : > { %v3044_v60 = vadd.f32 %v2565_v58, %v2118_v38  ;;  %v3040_v61 = vpop.f32.mrb[7].mxu1 }
 0x316   : > { %v2814_v62 = vmul.f32 -1.442695, %v3043_v57 }
 0x317   : > { %v2815_v63 = vmul.f32 -1.442695, %v3044_v60 }
 0x318   : > { %3168 = vpow2.f32 %v2814_v62 }
 0x319   : > { %3170 = vpow2.f32 %v2815_v63 }
 0x322   : > { %v3169_v0 = vpop.eup %3168 }
 0x323   : > { %v3171_v1 = vpop.eup %3170  ;;  %v2112_v2 = vadd.f32 1.0, %v3169_v0 }
 0x324   : > { %v2572_v3 = vadd.f32 1.0, %v3171_v1 }
 0x325   : > { %3172 = vrcp.f32 %v2112_v2 }
 0x326   : > { %3174 = vrcp.f32 %v2572_v3 }
 0x32f   : > { %v3173_v4 = vpop.eup %3172 }
 0x330   : > { %v3175_v5 = vpop.eup %3174  ;;  %v2575_v6 = vpack.c.bf16 %v3173_v4, %v3173_v4 }
 0x331   : > { %v2638_v7 = vpack.c.bf16 %v3175_v5, %v3175_v5 }
 0x332   : > { %2818 = vmatmul.mubr.msk.bf16.vlgmr.msra.gmra.mrb[8].mxu0 %vm2588_vm4, %v2575_v6 }
 0x333   : > { %2821 = vmatmul.mubr.msk.bf16.vlgmr.msra.gmra.mrb[8].mxu1 %vm2588_vm4, %v2638_v7 }
 0x405   : > { %v2626_v8 = vpop.f32.mrb[8].mxu0 }
 0x406   : > { %v2688_v9 = vpop.f32.mrb[8].mxu1  ;;  %v2628_v10 = vpop.f32.mrb[9].mxu0 }
 0x407   : > { %v2635_v11 = vcombine.low %v2626_v8, %v2628_v10  ;;  %v2690_v12 = vpop.f32.mrb[9].mxu1  ;;  %v2630_v13 = vpop.f32.mrb[10].mxu0 }
 0x408   : > { %v2697_v14 = vcombine.low %v2688_v9, %v2690_v12  ;;  %v2692_v15 = vpop.f32.mrb[10].mxu1  ;;  %v2631_v16 = vpop.f32.mrb[11].mxu0 }
 0x409   : > { %v2637_v17 = vmul.f32 %v2635_v11, %v3453_v32  ;;  %v2693_v18 = vpop.f32.mrb[11].mxu1 }
 0x40b   : > { %v2699_v19 = vmul.f32 %v2697_v14, %v2637_v17 }
 0x40d   : > { %2700 = vst [vmem:[%s379_s22] sm:$0xff] %v2699_v19 }
 0x40e   : > { %3189 = shalt.err (!%p3186_p3)
}
 0x40f   : > { %s3190_s16 = scalar_lea.hbm %s3592_s25, 128  ;;  %s3194_s22 = scalar_lea.hbm %s3645_s11, 256 }
 0x410   : > { %p3191_p4 = scmp.ne.s32.totalorder %s3592_s25, %s3190_s16  ;;  %p3195_p9 = scmp.lt.u32.totalorder %s3592_s25, %s3645_s11 }
 0x411   : > { %p3196_p10 = scmp.lt.u32.totalorder %s3194_s22, %s3190_s16  ;;  %p3198_p12 = scmp.lt.u32.totalorder %s3190_s16, %s3592_s25 }
 0x412   : > { %p3192_p7 = pnand %p3191_p4, %p3342_p5 }
 0x413   : > { %p3197_p11 = por %p3196_p10, %p3195_p9 }
 0x414   : > { %p3193_p8 = pneg %p3192_p7 }
 0x415   : > { %p3199_p13 = por %p3198_p12, %p3197_p11 }
 0x417   : > { %p3200_p0 = pnand %p3199_p13, %p3193_p8 }
 0x419   : > { %3203 = shalt.err (!%p3200_p0)
}
 0x41a   : > { %3085 = dma.vmem_to_hbm [thread:$0]  (%p3342_p5), %s3594_s19, 128, %s3592_s25, %s2702_s29  }
 0x41b PF: > { %p3091_p1 = scmp.ge.s32.totalorder %s3238_s20, 2  ;;  %s2728_s30 = sand.u32 1, %s3226_s17  }
 0x41c   : > { %s2729_s21 = scalar_lea.sflag [#allocation3], %s2728_s30 }
 0x41d   : > { %p3088_p2 = pnand %p3091_p1, %p3346_p6 }
 0x41f   : > { %3221 = dma.done.wait (!%p3088_p2), %s2729_s21, 128  }
 0x420   : > { %3223 = vsyncadd (!%p3088_p2), %s2729_s21, 4294967168  ;;  %s3651_s12 = sld [smem:[#allocation5_spill]]  ;;  %s3652_s19 = sld [smem:[#allocation6_spill]] }
 0x421   : > { %p21_p3 = scmp.ge.s32.totalorder %s3329_s23, 4   ;;  %s3653_s17 = smov %s3230_s18 }
 0x422   : > { %s3655_s20 = smov %s3329_s23 }
 0x423   :  { %23 = sbr.rel (!%p21_p3) target bundleno = 3 (0x3), region = 99 }
 0x426   : > { %s3654_s18 = smov %s3651_s12 }
 0x42a   :  { %2734 = vsyncpa [#allocation3], 1 }
 0x42b   :  { %2736 = vsyncpa [#allocation3 + $0x1], 1 }

</bundles_post_ra>
